<compile_context>
chip_gen: v5e
topology: v5e:2x2
jax: 0.10.0
libtpu: 0.0.40
codegen_flags: <defaults>
</compile_context>

<pallas_src>
import functools
import math

import jax
import jax.numpy as jnp
from jax.experimental import pallas as pl
from jax.experimental.pallas import tpu as pltpu

GATE_PAD = 128  # per-gate lane width: one full lane tile -> tile-aligned gate slices


# --------------------------------------------------------------------------
# Fused kernel: GRU encoder + mixture-density head, single lane-packed output.
# --------------------------------------------------------------------------
def blue_mi_kernel(x_ref, gru_ref, fc_ref, head_ref, out_ref, *,
                   T, Bp, Hp, h1, K, D):
    Dp = x_ref.shape[1]

    # ---- static slab views (one-time loads, off the recurrence path) -------
    w_i = gru_ref[0:Dp, :]                      # (Dp, 3Hp)
    w_h = gru_ref[Dp:Dp + Hp, :]                # (Hp, 3Hp)
    b_i = gru_ref[Dp + Hp:Dp + Hp + 1, :]       # (1, 3Hp)
    b_h = gru_ref[Dp + Hp + 1:Dp + Hp + 2, :]   # (1, 3Hp)

    # ---- encoder: x-side gate pre-activations for ALL timesteps in one pass
    gi = jnp.dot(x_ref[...], w_i, preferred_element_type=jnp.float32) + b_i  # (T*Bp, 3Hp)

    h = jnp.zeros((Bp, Hp), jnp.float32)
    for t in range(T):  # T small & static: unrolled serial recurrence
        gi_t = gi[t * Bp:(t + 1) * Bp, :]       # sublane-tile-aligned static slice
        gh = jnp.dot(h, w_h, preferred_element_type=jnp.float32) + b_h       # (Bp, 3Hp)
        r = jax.nn.sigmoid(gi_t[:, 0:Hp] + gh[:, 0:Hp])          # full-lane-tile slices
        zg = jax.nn.sigmoid(gi_t[:, Hp:2 * Hp] + gh[:, Hp:2 * Hp])
        n = jnp.tanh(gi_t[:, 2 * Hp:3 * Hp] + r * gh[:, 2 * Hp:3 * Hp])  # b_hn inside gh
        h = (1.0 - zg) * n + zg * h
    # Padded lanes of h stay exactly 0: sigmoid(0)=0.5, tanh(0)=0, 0.5*0 + 0.5*0 = 0.

    # ---- mixture head -------------------------------------------------------
    w_fc = fc_ref[0:Hp, :]                      # (Hp, h1)  (rows >= h1 are zero)
    w_cat = fc_ref[Hp:Hp + K, :]                # (K, h1)
    b_fc = fc_ref[Hp + K:Hp + K + 1, :]         # (1, h1)
    w_out = head_ref[0:h1, :]                   # (h1, 1+2D) = [w_pi | w_mu | w_sigma]
    b_out = head_ref[h1:h1 + 1, :]              # (1, 1+2D)

    # fc(cat(z, one_hot_k)) decomposes as z @ W_z + W_cat[k] + b_fc.
    base = jnp.dot(h, w_fc, preferred_element_type=jnp.float32) + b_fc       # (Bp, h1)

    pis, mus, sigs = [], [], []
    for k in range(K):  # K tiny & static; every op stays 2-D / tile-friendly
        hid = jnp.maximum(base + w_cat[k:k + 1, :], 0.0)                      # (Bp, h1)
        raw = jnp.dot(hid, w_out, preferred_element_type=jnp.float32) + b_out  # (Bp, 1+2D)
        pis.append(raw[:, 0:1])
        mus.append(raw[:, 1:1 + D])
        # exp(s) + 1e-4 is always > 0 -> only the upper clip is needed.
        sigs.append(jnp.minimum(jnp.exp(raw[:, 1 + D:1 + 2 * D]) + 1e-4, 1.0))

    logits = jnp.concatenate(pis, axis=1)                                     # (Bp, K)
    m = jnp.max(logits, axis=1, keepdims=True)
    e = jnp.exp(logits - m)
    pi = e * pl.reciprocal(jnp.sum(e, axis=1, keepdims=True), approx=True)    # softmax

    # Single lane-packed output slab: [pi (K) | mu (K*D) | sigma (K*D)].
    out_ref[...] = jnp.concatenate([pi] + mus + sigs, axis=1)


# --------------------------------------------------------------------------
# Wrapper: layout plumbing (transpose/pad/flatten) + single pallas_call.
# --------------------------------------------------------------------------
def blue_mi_mixture_forward(x, gru_slab, fc_slab, head_slab, num_mixtures, output_dim):
    B, T, Din = x.shape
    K, D = num_mixtures, output_dim
    h1 = fc_slab.shape[1]
    Hp = GATE_PAD
    Dp = gru_slab.shape[0] - Hp - 2
    Bp = max(8, ((B + 7) // 8) * 8)             # pad batch to a sublane multiple

    # Wrapper-side layout plumbing (XLA): batch-first -> time-major, pad B / D_in.
    xt = jnp.transpose(x.astype(jnp.float32), (1, 0, 2))        # (T, B, Din)
    xt = jnp.pad(xt, ((0, 0), (0, Bp - B), (0, Dp - Din)))
    x_in = xt.reshape(T * Bp, Dp)

    out_cols = K + 2 * K * D
    kernel = functools.partial(blue_mi_kernel, T=T, Bp=Bp, Hp=Hp, h1=h1, K=K, D=D)

    flops = (2 * T * Bp * Dp * 3 * Hp            # x-side gate matmul
             + T * 2 * Bp * Hp * 3 * Hp          # recurrent gate matmuls
             + 2 * Bp * Hp * h1                  # fc z-part
             + K * 2 * Bp * h1 * (1 + 2 * D))    # head matmuls
    transcend = T * Bp * 3 * Hp + Bp * K * (D + 1) + Bp
    bytes_acc = 4 * (x_in.size + gru_slab.size + fc_slab.size
                     + head_slab.size + Bp * out_cols)
    ce = pl.CostEstimate(flops=flops, transcendentals=transcend,
                         bytes_accessed=bytes_acc)

    vm = pl.BlockSpec(memory_space=pltpu.MemorySpace.VMEM)
    out = pl.pallas_call(
        kernel,
        out_shape=jax.ShapeDtypeStruct((Bp, out_cols), jnp.float32),
        in_specs=[vm, vm, vm, vm],
        out_specs=vm,
        cost_estimate=ce,
    )(x_in, gru_slab, fc_slab, head_slab)

    out = out[:B]
    pi = out[:, :K]
    mu = out[:, K:K + K * D].reshape(B, K, D)
    sigma = out[:, K + K * D:].reshape(B, K, D)
    return pi, mu, sigma


# --------------------------------------------------------------------------
# Deterministic parameters (logical layout, shapes per the module's __init__).
# --------------------------------------------------------------------------
def make_params(key, input_dim, output_dim, num_mixtures, h1):
    ks = jax.random.split(key, 20)

    def unif(k, shape, bound):
        return jax.random.uniform(k, shape, jnp.float32, -bound, bound)

    def xavier_normal(k, fan_in, fan_out):
        std = math.sqrt(2.0 / (fan_in + fan_out))
        return std * jax.random.normal(k, (fan_in, fan_out), jnp.float32)  # (in, out)

    gb = 1.0 / math.sqrt(h1)
    gru = dict(
        w_ir=unif(ks[0], (input_dim, h1), gb), w_iz=unif(ks[1], (input_dim, h1), gb),
        w_in=unif(ks[2], (input_dim, h1), gb),
        w_hr=unif(ks[3], (h1, h1), gb), w_hz=unif(ks[4], (h1, h1), gb),
        w_hn=unif(ks[5], (h1, h1), gb),
        b_ir=unif(ks[6], (h1,), gb), b_iz=unif(ks[7], (h1,), gb), b_in=unif(ks[8], (h1,), gb),
        b_hr=unif(ks[9], (h1,), gb), b_hz=unif(ks[10], (h1,), gb), b_hn=unif(ks[11], (h1,), gb),
    )
    net_in = h1 + num_mixtures
    fb = 1.0 / math.sqrt(net_in)
    head = dict(
        w_fc=unif(ks[12], (net_in, h1), fb),                  # (in, out)
        b_fc=unif(ks[13], (h1,), fb),
        w_pi=xavier_normal(ks[14], h1, 1),
        w_mu=xavier_normal(ks[15], h1, output_dim),
        w_sigma=xavier_normal(ks[16], h1, output_dim),
        b_pi=jnp.zeros((1,), jnp.float32),
        b_mu=jnp.zeros((output_dim,), jnp.float32),
        b_sigma=jnp.zeros((output_dim,), jnp.float32),
    )
    return dict(gru=gru, head=head)


def pack_params(params, input_dim, output_dim, num_mixtures, h1, gate_pad=GATE_PAD):
    """Pack the logical parameters into the 3 padded, fused slabs the kernel expects."""
    g, hd = params["gru"], params["head"]
    K, D, Hp = num_mixtures, output_dim, gate_pad
    Dp = max(8, ((input_dim + 7) // 8) * 8)

    gru_slab = jnp.zeros((Dp + Hp + 2, 3 * Hp), jnp.float32)
    gates = [(g["w_ir"], g["w_hr"], g["b_ir"], g["b_hr"]),
             (g["w_iz"], g["w_hz"], g["b_iz"], g["b_hz"]),
             (g["w_in"], g["w_hn"], g["b_in"], g["b_hn"])]
    for gidx, (wi, wh, bi, bh) in enumerate(gates):
        c = gidx * Hp
        gru_slab = gru_slab.at[:input_dim, c:c + h1].set(wi)
        gru_slab = gru_slab.at[Dp:Dp + h1, c:c + h1].set(wh)
        gru_slab = gru_slab.at[Dp + Hp, c:c + h1].set(bi)
        gru_slab = gru_slab.at[Dp + Hp + 1, c:c + h1].set(bh)

    fc_slab = jnp.zeros((Hp + K + 1, h1), jnp.float32)
    fc_slab = fc_slab.at[:h1, :].set(hd["w_fc"][:h1, :])
    fc_slab = fc_slab.at[Hp:Hp + K, :].set(hd["w_fc"][h1:, :])
    fc_slab = fc_slab.at[Hp + K, :].set(hd["b_fc"])

    head_slab = jnp.zeros((h1 + 1, 1 + 2 * D), jnp.float32)
    head_slab = head_slab.at[:h1, 0:1].set(hd["w_pi"])
    head_slab = head_slab.at[:h1, 1:1 + D].set(hd["w_mu"])
    head_slab = head_slab.at[:h1, 1 + D:].set(hd["w_sigma"])
    head_slab = head_slab.at[h1, 0].set(hd["b_pi"][0])
    head_slab = head_slab.at[h1, 1:1 + D].set(hd["b_mu"])
    head_slab = head_slab.at[h1, 1 + D:].set(hd["b_sigma"])
    return gru_slab, fc_slab, head_slab


# --------------------------------------------------------------------------
# Pure-JAX reference: un-fused math mirroring the PyTorch module (per-gate
# GRU matmuls, per-mixture loop with concat(z, one_hot)).
# --------------------------------------------------------------------------
def reference_forward(x, params, num_mixtures, output_dim):
    hp = jax.lax.Precision.HIGHEST
    g, hd = params["gru"], params["head"]
    B, T, _ = x.shape
    h1 = g["w_hr"].shape[0]

    hs = jnp.zeros((B, h1), jnp.float32)
    for t in range(T):
        xt = x[:, t, :]
        r = jax.nn.sigmoid(jnp.dot(xt, g["w_ir"], precision=hp) + g["b_ir"]
                           + jnp.dot(hs, g["w_hr"], precision=hp) + g["b_hr"])
        zg = jax.nn.sigmoid(jnp.dot(xt, g["w_iz"], precision=hp) + g["b_iz"]
                            + jnp.dot(hs, g["w_hz"], precision=hp) + g["b_hz"])
        n = jnp.tanh(jnp.dot(xt, g["w_in"], precision=hp) + g["b_in"]
                     + r * (jnp.dot(hs, g["w_hn"], precision=hp) + g["b_hn"]))
        hs = (1.0 - zg) * n + zg * hs
    z = hs

    eye = jnp.eye(num_mixtures, dtype=jnp.float32)
    pis, mus, sigs = [], [], []
    for i in range(num_mixtures):
        ins = jnp.concatenate([z, jnp.tile(eye[i][None, :], (B, 1))], axis=1)
        hid = jnp.maximum(jnp.dot(ins, hd["w_fc"], precision=hp) + hd["b_fc"], 0.0)
        pis.append(jnp.dot(hid, hd["w_pi"], precision=hp) + hd["b_pi"])
        mus.append(jnp.dot(hid, hd["w_mu"], precision=hp) + hd["b_mu"])
        sigs.append(jnp.clip(
            jnp.exp(jnp.dot(hid, hd["w_sigma"], precision=hp) + hd["b_sigma"]) + 1e-4,
            0.0, 1.0))
    pi = jax.nn.softmax(jnp.concatenate(pis, axis=-1), axis=1)
    return pi, jnp.stack(mus, axis=1), jnp.stack(sigs, axis=1)


if __name__ == "__main__":
    # Small shapes consistent with the module's forward.
    B, T = 4, 8
    input_dim, output_dim, num_mixtures, h1, h2 = 6, 2, 3, 32, 16  # h2 unused in forward

    key = jax.random.PRNGKey(0)
    kx, kp = jax.random.split(key)
    x = jax.random.normal(kx, (B, T, input_dim), jnp.float32)

    params = make_params(kp, input_dim, output_dim, num_mixtures, h1)
    gru_slab, fc_slab, head_slab = pack_params(params, input_dim, output_dim,
                                               num_mixtures, h1)

    pi, mu, sigma = jax.block_until_ready(
        blue_mi_mixture_forward(x, gru_slab, fc_slab, head_slab,
                                num_mixtures, output_dim))

    pi_r, mu_r, sig_r = reference_forward(x, params, num_mixtures, output_dim)
    assert pi.shape == (B, num_mixtures)
    assert mu.shape == (B, num_mixtures, output_dim)
    assert sigma.shape == (B, num_mixtures, output_dim)
    # pi uses the approximate EUP reciprocal; allow a slightly looser tolerance there.
    assert jnp.allclose(pi, pi_r, atol=2e-3, rtol=2e-3), "pi mismatch"
    assert jnp.allclose(mu, mu_r, atol=2e-3, rtol=2e-3), "mu mismatch"
    assert jnp.allclose(sigma, sig_r, atol=2e-3, rtol=2e-3), "sigma mismatch"

    print("KERNEL_OK")
</pallas_src>

<mosaic_0001>
module attributes {stable_mosaic.version = 11 : i64} {
  func.func @blue_mi_kernel(%arg0: memref<64x8xf32, #tpu.memory_space<vmem>>, %arg1: memref<138x384xf32, #tpu.memory_space<vmem>>, %arg2: memref<132x32xf32, #tpu.memory_space<vmem>>, %arg3: memref<33x5xf32, #tpu.memory_space<vmem>>, %arg4: memref<8x15xf32, #tpu.memory_space<vmem>>) attributes {dimension_semantics = [], scalar_prefetch = 0 : i64, scratch_operands = 0 : i64, tpu.core_type = #tpu.core_type<tc>} {
    %c0 = arith.constant 0 : index
    %c0_0 = arith.constant 0 : index
    %0 = vector.load %arg1[%c0, %c0_0] : memref<138x384xf32, #tpu.memory_space<vmem>>, vector<8x384xf32>
    %c8 = arith.constant 8 : index
    %c0_1 = arith.constant 0 : index
    %1 = vector.load %arg1[%c8, %c0_1] : memref<138x384xf32, #tpu.memory_space<vmem>>, vector<128x384xf32>
    %c136 = arith.constant 136 : index
    %c0_2 = arith.constant 0 : index
    %2 = vector.load %arg1[%c136, %c0_2] : memref<138x384xf32, #tpu.memory_space<vmem>>, vector<1x384xf32>
    %c137 = arith.constant 137 : index
    %c0_3 = arith.constant 0 : index
    %3 = vector.load %arg1[%c137, %c0_3] : memref<138x384xf32, #tpu.memory_space<vmem>>, vector<1x384xf32>
    %c0_4 = arith.constant 0 : index
    %c0_5 = arith.constant 0 : index
    %4 = vector.load %arg0[%c0_4, %c0_5] : memref<64x8xf32, #tpu.memory_space<vmem>>, vector<64x8xf32>
    %cst = arith.constant dense<0.000000e+00> : vector<64x384xf32>
    %5 = tpu.matmul %4, %0, %cst {dimension_numbers = #tpu.dot_dimension_numbers<[1], [0], [0], [1], [0, 0, 1, 1], [], []>} : vector<64x8xf32>, vector<8x384xf32>, vector<64x384xf32> -> vector<64x384xf32>
    %6 = vector.broadcast %2 : vector<1x384xf32> to vector<64x384xf32>
    %7 = arith.addf %5, %6 : vector<64x384xf32>
    %cst_6 = arith.constant 0.000000e+00 : f32
    %8 = vector.broadcast %cst_6 : f32 to vector<8x128xf32>
    %9 = vector.extract_strided_slice %7 {offsets = [0, 0], sizes = [8, 384], strides = [1, 1]} : vector<64x384xf32> to vector<8x384xf32>
    %cst_7 = arith.constant dense<0.000000e+00> : vector<8x384xf32>
    %10 = tpu.matmul %8, %1, %cst_7 {dimension_numbers = #tpu.dot_dimension_numbers<[1], [0], [0], [1], [0, 0, 1, 1], [], []>} : vector<8x128xf32>, vector<128x384xf32>, vector<8x384xf32> -> vector<8x384xf32>
    %11 = vector.broadcast %3 : vector<1x384xf32> to vector<8x384xf32>
    %12 = arith.addf %10, %11 : vector<8x384xf32>
    %13 = vector.extract_strided_slice %9 {offsets = [0, 0], sizes = [8, 128], strides = [1, 1]} : vector<8x384xf32> to vector<8x128xf32>
    %14 = vector.extract_strided_slice %12 {offsets = [0, 0], sizes = [8, 128], strides = [1, 1]} : vector<8x384xf32> to vector<8x128xf32>
    %15 = arith.addf %13, %14 : vector<8x128xf32>
    %16 = arith.negf %15 : vector<8x128xf32>
    %17 = math.exp %16 : vector<8x128xf32>
    %cst_8 = arith.constant 1.000000e+00 : f32
    %18 = vector.broadcast %cst_8 : f32 to vector<8x128xf32>
    %19 = arith.addf %18, %17 : vector<8x128xf32>
    %20 = arith.divf %18, %19 : vector<8x128xf32>
    %21 = vector.extract_strided_slice %9 {offsets = [0, 128], sizes = [8, 128], strides = [1, 1]} : vector<8x384xf32> to vector<8x128xf32>
    %22 = vector.extract_strided_slice %12 {offsets = [0, 128], sizes = [8, 128], strides = [1, 1]} : vector<8x384xf32> to vector<8x128xf32>
    %23 = arith.addf %21, %22 : vector<8x128xf32>
    %24 = arith.negf %23 : vector<8x128xf32>
    %25 = math.exp %24 : vector<8x128xf32>
    %cst_9 = arith.constant 1.000000e+00 : f32
    %26 = vector.broadcast %cst_9 : f32 to vector<8x128xf32>
    %27 = arith.addf %26, %25 : vector<8x128xf32>
    %28 = arith.divf %26, %27 : vector<8x128xf32>
    %29 = vector.extract_strided_slice %9 {offsets = [0, 256], sizes = [8, 128], strides = [1, 1]} : vector<8x384xf32> to vector<8x128xf32>
    %30 = vector.extract_strided_slice %12 {offsets = [0, 256], sizes = [8, 128], strides = [1, 1]} : vector<8x384xf32> to vector<8x128xf32>
    %31 = arith.mulf %20, %30 : vector<8x128xf32>
    %32 = arith.addf %29, %31 : vector<8x128xf32>
    %33 = math.tanh %32 : vector<8x128xf32>
    %cst_10 = arith.constant 1.000000e+00 : f32
    %34 = vector.broadcast %cst_10 : f32 to vector<8x128xf32>
    %35 = arith.subf %34, %28 : vector<8x128xf32>
    %36 = arith.mulf %35, %33 : vector<8x128xf32>
    %37 = arith.mulf %28, %8 : vector<8x128xf32>
    %38 = arith.addf %36, %37 : vector<8x128xf32>
    %39 = vector.extract_strided_slice %7 {offsets = [8, 0], sizes = [8, 384], strides = [1, 1]} : vector<64x384xf32> to vector<8x384xf32>
    %cst_11 = arith.constant dense<0.000000e+00> : vector<8x384xf32>
    %40 = tpu.matmul %38, %1, %cst_11 {dimension_numbers = #tpu.dot_dimension_numbers<[1], [0], [0], [1], [0, 0, 1, 1], [], []>} : vector<8x128xf32>, vector<128x384xf32>, vector<8x384xf32> -> vector<8x384xf32>
    %41 = vector.broadcast %3 : vector<1x384xf32> to vector<8x384xf32>
    %42 = arith.addf %40, %41 : vector<8x384xf32>
    %43 = vector.extract_strided_slice %39 {offsets = [0, 0], sizes = [8, 128], strides = [1, 1]} : vector<8x384xf32> to vector<8x128xf32>
    %44 = vector.extract_strided_slice %42 {offsets = [0, 0], sizes = [8, 128], strides = [1, 1]} : vector<8x384xf32> to vector<8x128xf32>
    %45 = arith.addf %43, %44 : vector<8x128xf32>
    %46 = arith.negf %45 : vector<8x128xf32>
    %47 = math.exp %46 : vector<8x128xf32>
    %cst_12 = arith.constant 1.000000e+00 : f32
    %48 = vector.broadcast %cst_12 : f32 to vector<8x128xf32>
    %49 = arith.addf %48, %47 : vector<8x128xf32>
    %50 = arith.divf %48, %49 : vector<8x128xf32>
    %51 = vector.extract_strided_slice %39 {offsets = [0, 128], sizes = [8, 128], strides = [1, 1]} : vector<8x384xf32> to vector<8x128xf32>
    %52 = vector.extract_strided_slice %42 {offsets = [0, 128], sizes = [8, 128], strides = [1, 1]} : vector<8x384xf32> to vector<8x128xf32>
    %53 = arith.addf %51, %52 : vector<8x128xf32>
    %54 = arith.negf %53 : vector<8x128xf32>
    %55 = math.exp %54 : vector<8x128xf32>
    %cst_13 = arith.constant 1.000000e+00 : f32
    %56 = vector.broadcast %cst_13 : f32 to vector<8x128xf32>
    %57 = arith.addf %56, %55 : vector<8x128xf32>
    %58 = arith.divf %56, %57 : vector<8x128xf32>
    %59 = vector.extract_strided_slice %39 {offsets = [0, 256], sizes = [8, 128], strides = [1, 1]} : vector<8x384xf32> to vector<8x128xf32>
    %60 = vector.extract_strided_slice %42 {offsets = [0, 256], sizes = [8, 128], strides = [1, 1]} : vector<8x384xf32> to vector<8x128xf32>
    %61 = arith.mulf %50, %60 : vector<8x128xf32>
    %62 = arith.addf %59, %61 : vector<8x128xf32>
    %63 = math.tanh %62 : vector<8x128xf32>
    %cst_14 = arith.constant 1.000000e+00 : f32
    %64 = vector.broadcast %cst_14 : f32 to vector<8x128xf32>
    %65 = arith.subf %64, %58 : vector<8x128xf32>
    %66 = arith.mulf %65, %63 : vector<8x128xf32>
    %67 = arith.mulf %58, %38 : vector<8x128xf32>
    %68 = arith.addf %66, %67 : vector<8x128xf32>
    %69 = vector.extract_strided_slice %7 {offsets = [16, 0], sizes = [8, 384], strides = [1, 1]} : vector<64x384xf32> to vector<8x384xf32>
    %cst_15 = arith.constant dense<0.000000e+00> : vector<8x384xf32>
    %70 = tpu.matmul %68, %1, %cst_15 {dimension_numbers = #tpu.dot_dimension_numbers<[1], [0], [0], [1], [0, 0, 1, 1], [], []>} : vector<8x128xf32>, vector<128x384xf32>, vector<8x384xf32> -> vector<8x384xf32>
    %71 = vector.broadcast %3 : vector<1x384xf32> to vector<8x384xf32>
    %72 = arith.addf %70, %71 : vector<8x384xf32>
    %73 = vector.extract_strided_slice %69 {offsets = [0, 0], sizes = [8, 128], strides = [1, 1]} : vector<8x384xf32> to vector<8x128xf32>
    %74 = vector.extract_strided_slice %72 {offsets = [0, 0], sizes = [8, 128], strides = [1, 1]} : vector<8x384xf32> to vector<8x128xf32>
    %75 = arith.addf %73, %74 : vector<8x128xf32>
    %76 = arith.negf %75 : vector<8x128xf32>
    %77 = math.exp %76 : vector<8x128xf32>
    %cst_16 = arith.constant 1.000000e+00 : f32
    %78 = vector.broadcast %cst_16 : f32 to vector<8x128xf32>
    %79 = arith.addf %78, %77 : vector<8x128xf32>
    %80 = arith.divf %78, %79 : vector<8x128xf32>
    %81 = vector.extract_strided_slice %69 {offsets = [0, 128], sizes = [8, 128], strides = [1, 1]} : vector<8x384xf32> to vector<8x128xf32>
    %82 = vector.extract_strided_slice %72 {offsets = [0, 128], sizes = [8, 128], strides = [1, 1]} : vector<8x384xf32> to vector<8x128xf32>
    %83 = arith.addf %81, %82 : vector<8x128xf32>
    %84 = arith.negf %83 : vector<8x128xf32>
    %85 = math.exp %84 : vector<8x128xf32>
    %cst_17 = arith.constant 1.000000e+00 : f32
    %86 = vector.broadcast %cst_17 : f32 to vector<8x128xf32>
    %87 = arith.addf %86, %85 : vector<8x128xf32>
    %88 = arith.divf %86, %87 : vector<8x128xf32>
    %89 = vector.extract_strided_slice %69 {offsets = [0, 256], sizes = [8, 128], strides = [1, 1]} : vector<8x384xf32> to vector<8x128xf32>
    %90 = vector.extract_strided_slice %72 {offsets = [0, 256], sizes = [8, 128], strides = [1, 1]} : vector<8x384xf32> to vector<8x128xf32>
    %91 = arith.mulf %80, %90 : vector<8x128xf32>
    %92 = arith.addf %89, %91 : vector<8x128xf32>
    %93 = math.tanh %92 : vector<8x128xf32>
    %cst_18 = arith.constant 1.000000e+00 : f32
    %94 = vector.broadcast %cst_18 : f32 to vector<8x128xf32>
    %95 = arith.subf %94, %88 : vector<8x128xf32>
    %96 = arith.mulf %95, %93 : vector<8x128xf32>
    %97 = arith.mulf %88, %68 : vector<8x128xf32>
    %98 = arith.addf %96, %97 : vector<8x128xf32>
    %99 = vector.extract_strided_slice %7 {offsets = [24, 0], sizes = [8, 384], strides = [1, 1]} : vector<64x384xf32> to vector<8x384xf32>
    %cst_19 = arith.constant dense<0.000000e+00> : vector<8x384xf32>
    %100 = tpu.matmul %98, %1, %cst_19 {dimension_numbers = #tpu.dot_dimension_numbers<[1], [0], [0], [1], [0, 0, 1, 1], [], []>} : vector<8x128xf32>, vector<128x384xf32>, vector<8x384xf32> -> vector<8x384xf32>
    %101 = vector.broadcast %3 : vector<1x384xf32> to vector<8x384xf32>
    %102 = arith.addf %100, %101 : vector<8x384xf32>
    %103 = vector.extract_strided_slice %99 {offsets = [0, 0], sizes = [8, 128], strides = [1, 1]} : vector<8x384xf32> to vector<8x128xf32>
    %104 = vector.extract_strided_slice %102 {offsets = [0, 0], sizes = [8, 128], strides = [1, 1]} : vector<8x384xf32> to vector<8x128xf32>
    %105 = arith.addf %103, %104 : vector<8x128xf32>
    %106 = arith.negf %105 : vector<8x128xf32>
    %107 = math.exp %106 : vector<8x128xf32>
    %cst_20 = arith.constant 1.000000e+00 : f32
    %108 = vector.broadcast %cst_20 : f32 to vector<8x128xf32>
    %109 = arith.addf %108, %107 : vector<8x128xf32>
    %110 = arith.divf %108, %109 : vector<8x128xf32>
    %111 = vector.extract_strided_slice %99 {offsets = [0, 128], sizes = [8, 128], strides = [1, 1]} : vector<8x384xf32> to vector<8x128xf32>
    %112 = vector.extract_strided_slice %102 {offsets = [0, 128], sizes = [8, 128], strides = [1, 1]} : vector<8x384xf32> to vector<8x128xf32>
    %113 = arith.addf %111, %112 : vector<8x128xf32>
    %114 = arith.negf %113 : vector<8x128xf32>
    %115 = math.exp %114 : vector<8x128xf32>
    %cst_21 = arith.constant 1.000000e+00 : f32
    %116 = vector.broadcast %cst_21 : f32 to vector<8x128xf32>
    %117 = arith.addf %116, %115 : vector<8x128xf32>
    %118 = arith.divf %116, %117 : vector<8x128xf32>
    %119 = vector.extract_strided_slice %99 {offsets = [0, 256], sizes = [8, 128], strides = [1, 1]} : vector<8x384xf32> to vector<8x128xf32>
    %120 = vector.extract_strided_slice %102 {offsets = [0, 256], sizes = [8, 128], strides = [1, 1]} : vector<8x384xf32> to vector<8x128xf32>
    %121 = arith.mulf %110, %120 : vector<8x128xf32>
    %122 = arith.addf %119, %121 : vector<8x128xf32>
    %123 = math.tanh %122 : vector<8x128xf32>
    %cst_22 = arith.constant 1.000000e+00 : f32
    %124 = vector.broadcast %cst_22 : f32 to vector<8x128xf32>
    %125 = arith.subf %124, %118 : vector<8x128xf32>
    %126 = arith.mulf %125, %123 : vector<8x128xf32>
    %127 = arith.mulf %118, %98 : vector<8x128xf32>
    %128 = arith.addf %126, %127 : vector<8x128xf32>
    %129 = vector.extract_strided_slice %7 {offsets = [32, 0], sizes = [8, 384], strides = [1, 1]} : vector<64x384xf32> to vector<8x384xf32>
    %cst_23 = arith.constant dense<0.000000e+00> : vector<8x384xf32>
    %130 = tpu.matmul %128, %1, %cst_23 {dimension_numbers = #tpu.dot_dimension_numbers<[1], [0], [0], [1], [0, 0, 1, 1], [], []>} : vector<8x128xf32>, vector<128x384xf32>, vector<8x384xf32> -> vector<8x384xf32>
    %131 = vector.broadcast %3 : vector<1x384xf32> to vector<8x384xf32>
    %132 = arith.addf %130, %131 : vector<8x384xf32>
    %133 = vector.extract_strided_slice %129 {offsets = [0, 0], sizes = [8, 128], strides = [1, 1]} : vector<8x384xf32> to vector<8x128xf32>
    %134 = vector.extract_strided_slice %132 {offsets = [0, 0], sizes = [8, 128], strides = [1, 1]} : vector<8x384xf32> to vector<8x128xf32>
    %135 = arith.addf %133, %134 : vector<8x128xf32>
    %136 = arith.negf %135 : vector<8x128xf32>
    %137 = math.exp %136 : vector<8x128xf32>
    %cst_24 = arith.constant 1.000000e+00 : f32
    %138 = vector.broadcast %cst_24 : f32 to vector<8x128xf32>
    %139 = arith.addf %138, %137 : vector<8x128xf32>
    %140 = arith.divf %138, %139 : vector<8x128xf32>
    %141 = vector.extract_strided_slice %129 {offsets = [0, 128], sizes = [8, 128], strides = [1, 1]} : vector<8x384xf32> to vector<8x128xf32>
    %142 = vector.extract_strided_slice %132 {offsets = [0, 128], sizes = [8, 128], strides = [1, 1]} : vector<8x384xf32> to vector<8x128xf32>
    %143 = arith.addf %141, %142 : vector<8x128xf32>
    %144 = arith.negf %143 : vector<8x128xf32>
    %145 = math.exp %144 : vector<8x128xf32>
    %cst_25 = arith.constant 1.000000e+00 : f32
    %146 = vector.broadcast %cst_25 : f32 to vector<8x128xf32>
    %147 = arith.addf %146, %145 : vector<8x128xf32>
    %148 = arith.divf %146, %147 : vector<8x128xf32>
    %149 = vector.extract_strided_slice %129 {offsets = [0, 256], sizes = [8, 128], strides = [1, 1]} : vector<8x384xf32> to vector<8x128xf32>
    %150 = vector.extract_strided_slice %132 {offsets = [0, 256], sizes = [8, 128], strides = [1, 1]} : vector<8x384xf32> to vector<8x128xf32>
    %151 = arith.mulf %140, %150 : vector<8x128xf32>
    %152 = arith.addf %149, %151 : vector<8x128xf32>
    %153 = math.tanh %152 : vector<8x128xf32>
    %cst_26 = arith.constant 1.000000e+00 : f32
    %154 = vector.broadcast %cst_26 : f32 to vector<8x128xf32>
    %155 = arith.subf %154, %148 : vector<8x128xf32>
    %156 = arith.mulf %155, %153 : vector<8x128xf32>
    %157 = arith.mulf %148, %128 : vector<8x128xf32>
    %158 = arith.addf %156, %157 : vector<8x128xf32>
    %159 = vector.extract_strided_slice %7 {offsets = [40, 0], sizes = [8, 384], strides = [1, 1]} : vector<64x384xf32> to vector<8x384xf32>
    %cst_27 = arith.constant dense<0.000000e+00> : vector<8x384xf32>
    %160 = tpu.matmul %158, %1, %cst_27 {dimension_numbers = #tpu.dot_dimension_numbers<[1], [0], [0], [1], [0, 0, 1, 1], [], []>} : vector<8x128xf32>, vector<128x384xf32>, vector<8x384xf32> -> vector<8x384xf32>
    %161 = vector.broadcast %3 : vector<1x384xf32> to vector<8x384xf32>
    %162 = arith.addf %160, %161 : vector<8x384xf32>
    %163 = vector.extract_strided_slice %159 {offsets = [0, 0], sizes = [8, 128], strides = [1, 1]} : vector<8x384xf32> to vector<8x128xf32>
    %164 = vector.extract_strided_slice %162 {offsets = [0, 0], sizes = [8, 128], strides = [1, 1]} : vector<8x384xf32> to vector<8x128xf32>
    %165 = arith.addf %163, %164 : vector<8x128xf32>
    %166 = arith.negf %165 : vector<8x128xf32>
    %167 = math.exp %166 : vector<8x128xf32>
    %cst_28 = arith.constant 1.000000e+00 : f32
    %168 = vector.broadcast %cst_28 : f32 to vector<8x128xf32>
    %169 = arith.addf %168, %167 : vector<8x128xf32>
    %170 = arith.divf %168, %169 : vector<8x128xf32>
    %171 = vector.extract_strided_slice %159 {offsets = [0, 128], sizes = [8, 128], strides = [1, 1]} : vector<8x384xf32> to vector<8x128xf32>
    %172 = vector.extract_strided_slice %162 {offsets = [0, 128], sizes = [8, 128], strides = [1, 1]} : vector<8x384xf32> to vector<8x128xf32>
    %173 = arith.addf %171, %172 : vector<8x128xf32>
    %174 = arith.negf %173 : vector<8x128xf32>
    %175 = math.exp %174 : vector<8x128xf32>
    %cst_29 = arith.constant 1.000000e+00 : f32
    %176 = vector.broadcast %cst_29 : f32 to vector<8x128xf32>
    %177 = arith.addf %176, %175 : vector<8x128xf32>
    %178 = arith.divf %176, %177 : vector<8x128xf32>
    %179 = vector.extract_strided_slice %159 {offsets = [0, 256], sizes = [8, 128], strides = [1, 1]} : vector<8x384xf32> to vector<8x128xf32>
    %180 = vector.extract_strided_slice %162 {offsets = [0, 256], sizes = [8, 128], strides = [1, 1]} : vector<8x384xf32> to vector<8x128xf32>
    %181 = arith.mulf %170, %180 : vector<8x128xf32>
    %182 = arith.addf %179, %181 : vector<8x128xf32>
    %183 = math.tanh %182 : vector<8x128xf32>
    %cst_30 = arith.constant 1.000000e+00 : f32
    %184 = vector.broadcast %cst_30 : f32 to vector<8x128xf32>
    %185 = arith.subf %184, %178 : vector<8x128xf32>
    %186 = arith.mulf %185, %183 : vector<8x128xf32>
    %187 = arith.mulf %178, %158 : vector<8x128xf32>
    %188 = arith.addf %186, %187 : vector<8x128xf32>
    %189 = vector.extract_strided_slice %7 {offsets = [48, 0], sizes = [8, 384], strides = [1, 1]} : vector<64x384xf32> to vector<8x384xf32>
    %cst_31 = arith.constant dense<0.000000e+00> : vector<8x384xf32>
    %190 = tpu.matmul %188, %1, %cst_31 {dimension_numbers = #tpu.dot_dimension_numbers<[1], [0], [0], [1], [0, 0, 1, 1], [], []>} : vector<8x128xf32>, vector<128x384xf32>, vector<8x384xf32> -> vector<8x384xf32>
    %191 = vector.broadcast %3 : vector<1x384xf32> to vector<8x384xf32>
    %192 = arith.addf %190, %191 : vector<8x384xf32>
    %193 = vector.extract_strided_slice %189 {offsets = [0, 0], sizes = [8, 128], strides = [1, 1]} : vector<8x384xf32> to vector<8x128xf32>
    %194 = vector.extract_strided_slice %192 {offsets = [0, 0], sizes = [8, 128], strides = [1, 1]} : vector<8x384xf32> to vector<8x128xf32>
    %195 = arith.addf %193, %194 : vector<8x128xf32>
    %196 = arith.negf %195 : vector<8x128xf32>
    %197 = math.exp %196 : vector<8x128xf32>
    %cst_32 = arith.constant 1.000000e+00 : f32
    %198 = vector.broadcast %cst_32 : f32 to vector<8x128xf32>
    %199 = arith.addf %198, %197 : vector<8x128xf32>
    %200 = arith.divf %198, %199 : vector<8x128xf32>
    %201 = vector.extract_strided_slice %189 {offsets = [0, 128], sizes = [8, 128], strides = [1, 1]} : vector<8x384xf32> to vector<8x128xf32>
    %202 = vector.extract_strided_slice %192 {offsets = [0, 128], sizes = [8, 128], strides = [1, 1]} : vector<8x384xf32> to vector<8x128xf32>
    %203 = arith.addf %201, %202 : vector<8x128xf32>
    %204 = arith.negf %203 : vector<8x128xf32>
    %205 = math.exp %204 : vector<8x128xf32>
    %cst_33 = arith.constant 1.000000e+00 : f32
    %206 = vector.broadcast %cst_33 : f32 to vector<8x128xf32>
    %207 = arith.addf %206, %205 : vector<8x128xf32>
    %208 = arith.divf %206, %207 : vector<8x128xf32>
    %209 = vector.extract_strided_slice %189 {offsets = [0, 256], sizes = [8, 128], strides = [1, 1]} : vector<8x384xf32> to vector<8x128xf32>
    %210 = vector.extract_strided_slice %192 {offsets = [0, 256], sizes = [8, 128], strides = [1, 1]} : vector<8x384xf32> to vector<8x128xf32>
    %211 = arith.mulf %200, %210 : vector<8x128xf32>
    %212 = arith.addf %209, %211 : vector<8x128xf32>
    %213 = math.tanh %212 : vector<8x128xf32>
    %cst_34 = arith.constant 1.000000e+00 : f32
    %214 = vector.broadcast %cst_34 : f32 to vector<8x128xf32>
    %215 = arith.subf %214, %208 : vector<8x128xf32>
    %216 = arith.mulf %215, %213 : vector<8x128xf32>
    %217 = arith.mulf %208, %188 : vector<8x128xf32>
    %218 = arith.addf %216, %217 : vector<8x128xf32>
    %219 = vector.extract_strided_slice %7 {offsets = [56, 0], sizes = [8, 384], strides = [1, 1]} : vector<64x384xf32> to vector<8x384xf32>
    %cst_35 = arith.constant dense<0.000000e+00> : vector<8x384xf32>
    %220 = tpu.matmul %218, %1, %cst_35 {dimension_numbers = #tpu.dot_dimension_numbers<[1], [0], [0], [1], [0, 0, 1, 1], [], []>} : vector<8x128xf32>, vector<128x384xf32>, vector<8x384xf32> -> vector<8x384xf32>
    %221 = vector.broadcast %3 : vector<1x384xf32> to vector<8x384xf32>
    %222 = arith.addf %220, %221 : vector<8x384xf32>
    %223 = vector.extract_strided_slice %219 {offsets = [0, 0], sizes = [8, 128], strides = [1, 1]} : vector<8x384xf32> to vector<8x128xf32>
    %224 = vector.extract_strided_slice %222 {offsets = [0, 0], sizes = [8, 128], strides = [1, 1]} : vector<8x384xf32> to vector<8x128xf32>
    %225 = arith.addf %223, %224 : vector<8x128xf32>
    %226 = arith.negf %225 : vector<8x128xf32>
    %227 = math.exp %226 : vector<8x128xf32>
    %cst_36 = arith.constant 1.000000e+00 : f32
    %228 = vector.broadcast %cst_36 : f32 to vector<8x128xf32>
    %229 = arith.addf %228, %227 : vector<8x128xf32>
    %230 = arith.divf %228, %229 : vector<8x128xf32>
    %231 = vector.extract_strided_slice %219 {offsets = [0, 128], sizes = [8, 128], strides = [1, 1]} : vector<8x384xf32> to vector<8x128xf32>
    %232 = vector.extract_strided_slice %222 {offsets = [0, 128], sizes = [8, 128], strides = [1, 1]} : vector<8x384xf32> to vector<8x128xf32>
    %233 = arith.addf %231, %232 : vector<8x128xf32>
    %234 = arith.negf %233 : vector<8x128xf32>
    %235 = math.exp %234 : vector<8x128xf32>
    %cst_37 = arith.constant 1.000000e+00 : f32
    %236 = vector.broadcast %cst_37 : f32 to vector<8x128xf32>
    %237 = arith.addf %236, %235 : vector<8x128xf32>
    %238 = arith.divf %236, %237 : vector<8x128xf32>
    %239 = vector.extract_strided_slice %219 {offsets = [0, 256], sizes = [8, 128], strides = [1, 1]} : vector<8x384xf32> to vector<8x128xf32>
    %240 = vector.extract_strided_slice %222 {offsets = [0, 256], sizes = [8, 128], strides = [1, 1]} : vector<8x384xf32> to vector<8x128xf32>
    %241 = arith.mulf %230, %240 : vector<8x128xf32>
    %242 = arith.addf %239, %241 : vector<8x128xf32>
    %243 = math.tanh %242 : vector<8x128xf32>
    %cst_38 = arith.constant 1.000000e+00 : f32
    %244 = vector.broadcast %cst_38 : f32 to vector<8x128xf32>
    %245 = arith.subf %244, %238 : vector<8x128xf32>
    %246 = arith.mulf %245, %243 : vector<8x128xf32>
    %247 = arith.mulf %238, %218 : vector<8x128xf32>
    %248 = arith.addf %246, %247 : vector<8x128xf32>
    %c0_39 = arith.constant 0 : index
    %c0_40 = arith.constant 0 : index
    %249 = vector.load %arg2[%c0_39, %c0_40] : memref<132x32xf32, #tpu.memory_space<vmem>>, vector<128x32xf32>
    %c128 = arith.constant 128 : index
    %c0_41 = arith.constant 0 : index
    %250 = vector.load %arg2[%c128, %c0_41] : memref<132x32xf32, #tpu.memory_space<vmem>>, vector<3x32xf32>
    %c131 = arith.constant 131 : index
    %c0_42 = arith.constant 0 : index
    %251 = vector.load %arg2[%c131, %c0_42] : memref<132x32xf32, #tpu.memory_space<vmem>>, vector<1x32xf32>
    %c0_43 = arith.constant 0 : index
    %c0_44 = arith.constant 0 : index
    %252 = vector.load %arg3[%c0_43, %c0_44] : memref<33x5xf32, #tpu.memory_space<vmem>>, vector<32x5xf32>
    %c32 = arith.constant 32 : index
    %c0_45 = arith.constant 0 : index
    %253 = vector.load %arg3[%c32, %c0_45] : memref<33x5xf32, #tpu.memory_space<vmem>>, vector<1x5xf32>
    %cst_46 = arith.constant dense<0.000000e+00> : vector<8x32xf32>
    %254 = tpu.matmul %248, %249, %cst_46 {dimension_numbers = #tpu.dot_dimension_numbers<[1], [0], [0], [1], [0, 0, 1, 1], [], []>} : vector<8x128xf32>, vector<128x32xf32>, vector<8x32xf32> -> vector<8x32xf32>
    %255 = vector.broadcast %251 : vector<1x32xf32> to vector<8x32xf32>
    %256 = arith.addf %254, %255 : vector<8x32xf32>
    %257 = vector.extract_strided_slice %250 {offsets = [0, 0], sizes = [1, 32], strides = [1, 1]} : vector<3x32xf32> to vector<1x32xf32>
    %258 = vector.broadcast %257 : vector<1x32xf32> to vector<8x32xf32>
    %259 = arith.addf %256, %258 : vector<8x32xf32>
    %cst_47 = arith.constant 0.000000e+00 : f32
    %260 = vector.broadcast %cst_47 : f32 to vector<8x32xf32>
    %261 = arith.maximumf %259, %260 : vector<8x32xf32>
    %cst_48 = arith.constant dense<0.000000e+00> : vector<8x5xf32>
    %262 = tpu.matmul %261, %252, %cst_48 {dimension_numbers = #tpu.dot_dimension_numbers<[1], [0], [0], [1], [0, 0, 1, 1], [], []>} : vector<8x32xf32>, vector<32x5xf32>, vector<8x5xf32> -> vector<8x5xf32>
    %263 = vector.broadcast %253 : vector<1x5xf32> to vector<8x5xf32>
    %264 = arith.addf %262, %263 : vector<8x5xf32>
    %265 = vector.extract_strided_slice %264 {offsets = [0, 0], sizes = [8, 1], strides = [1, 1]} : vector<8x5xf32> to vector<8x1xf32>
    %266 = vector.extract_strided_slice %264 {offsets = [0, 1], sizes = [8, 2], strides = [1, 1]} : vector<8x5xf32> to vector<8x2xf32>
    %267 = vector.extract_strided_slice %264 {offsets = [0, 3], sizes = [8, 2], strides = [1, 1]} : vector<8x5xf32> to vector<8x2xf32>
    %268 = math.exp %267 : vector<8x2xf32>
    %cst_49 = arith.constant 9.99999974E-5 : f32
    %269 = vector.broadcast %cst_49 : f32 to vector<8x2xf32>
    %270 = arith.addf %268, %269 : vector<8x2xf32>
    %cst_50 = arith.constant 1.000000e+00 : f32
    %271 = vector.broadcast %cst_50 : f32 to vector<8x2xf32>
    %272 = arith.minimumf %270, %271 : vector<8x2xf32>
    %273 = vector.extract_strided_slice %250 {offsets = [1, 0], sizes = [1, 32], strides = [1, 1]} : vector<3x32xf32> to vector<1x32xf32>
    %274 = vector.broadcast %273 : vector<1x32xf32> to vector<8x32xf32>
    %275 = arith.addf %256, %274 : vector<8x32xf32>
    %cst_51 = arith.constant 0.000000e+00 : f32
    %276 = vector.broadcast %cst_51 : f32 to vector<8x32xf32>
    %277 = arith.maximumf %275, %276 : vector<8x32xf32>
    %cst_52 = arith.constant dense<0.000000e+00> : vector<8x5xf32>
    %278 = tpu.matmul %277, %252, %cst_52 {dimension_numbers = #tpu.dot_dimension_numbers<[1], [0], [0], [1], [0, 0, 1, 1], [], []>} : vector<8x32xf32>, vector<32x5xf32>, vector<8x5xf32> -> vector<8x5xf32>
    %279 = vector.broadcast %253 : vector<1x5xf32> to vector<8x5xf32>
    %280 = arith.addf %278, %279 : vector<8x5xf32>
    %281 = vector.extract_strided_slice %280 {offsets = [0, 0], sizes = [8, 1], strides = [1, 1]} : vector<8x5xf32> to vector<8x1xf32>
    %282 = vector.extract_strided_slice %280 {offsets = [0, 1], sizes = [8, 2], strides = [1, 1]} : vector<8x5xf32> to vector<8x2xf32>
    %283 = vector.extract_strided_slice %280 {offsets = [0, 3], sizes = [8, 2], strides = [1, 1]} : vector<8x5xf32> to vector<8x2xf32>
    %284 = math.exp %283 : vector<8x2xf32>
    %cst_53 = arith.constant 9.99999974E-5 : f32
    %285 = vector.broadcast %cst_53 : f32 to vector<8x2xf32>
    %286 = arith.addf %284, %285 : vector<8x2xf32>
    %cst_54 = arith.constant 1.000000e+00 : f32
    %287 = vector.broadcast %cst_54 : f32 to vector<8x2xf32>
    %288 = arith.minimumf %286, %287 : vector<8x2xf32>
    %289 = vector.extract_strided_slice %250 {offsets = [2, 0], sizes = [1, 32], strides = [1, 1]} : vector<3x32xf32> to vector<1x32xf32>
    %290 = vector.broadcast %289 : vector<1x32xf32> to vector<8x32xf32>
    %291 = arith.addf %256, %290 : vector<8x32xf32>
    %cst_55 = arith.constant 0.000000e+00 : f32
    %292 = vector.broadcast %cst_55 : f32 to vector<8x32xf32>
    %293 = arith.maximumf %291, %292 : vector<8x32xf32>
    %cst_56 = arith.constant dense<0.000000e+00> : vector<8x5xf32>
    %294 = tpu.matmul %293, %252, %cst_56 {dimension_numbers = #tpu.dot_dimension_numbers<[1], [0], [0], [1], [0, 0, 1, 1], [], []>} : vector<8x32xf32>, vector<32x5xf32>, vector<8x5xf32> -> vector<8x5xf32>
    %295 = vector.broadcast %253 : vector<1x5xf32> to vector<8x5xf32>
    %296 = arith.addf %294, %295 : vector<8x5xf32>
    %297 = vector.extract_strided_slice %296 {offsets = [0, 0], sizes = [8, 1], strides = [1, 1]} : vector<8x5xf32> to vector<8x1xf32>
    %298 = vector.extract_strided_slice %296 {offsets = [0, 1], sizes = [8, 2], strides = [1, 1]} : vector<8x5xf32> to vector<8x2xf32>
    %299 = vector.extract_strided_slice %296 {offsets = [0, 3], sizes = [8, 2], strides = [1, 1]} : vector<8x5xf32> to vector<8x2xf32>
    %300 = math.exp %299 : vector<8x2xf32>
    %cst_57 = arith.constant 9.99999974E-5 : f32
    %301 = vector.broadcast %cst_57 : f32 to vector<8x2xf32>
    %302 = arith.addf %300, %301 : vector<8x2xf32>
    %cst_58 = arith.constant 1.000000e+00 : f32
    %303 = vector.broadcast %cst_58 : f32 to vector<8x2xf32>
    %304 = arith.minimumf %302, %303 : vector<8x2xf32>
    %305 = tpu.concatenate %265, %281, %297 in 1 : vector<8x1xf32>, vector<8x1xf32>, vector<8x1xf32> -> vector<8x3xf32>
    %cst_59 = arith.constant dense<0xFF800000> : vector<8xf32>
    %306 = vector.multi_reduction <maximumf>, %305, %cst_59 [1] : vector<8x3xf32> to vector<8xf32>
    %307 = vector.shape_cast %306 : vector<8xf32> to vector<8x1xf32>
    %308 = vector.broadcast %307 : vector<8x1xf32> to vector<8x3xf32>
    %309 = arith.subf %305, %308 : vector<8x3xf32>
    %310 = math.exp %309 : vector<8x3xf32>
    %cst_60 = arith.constant dense<0.000000e+00> : vector<8xf32>
    %311 = vector.multi_reduction <add>, %310, %cst_60 [1] : vector<8x3xf32> to vector<8xf32>
    %312 = vector.shape_cast %311 : vector<8xf32> to vector<8x1xf32>
    %313 = tpu.reciprocal %312 {approx = true} : vector<8x1xf32> -> vector<8x1xf32>
    %314 = vector.broadcast %313 : vector<8x1xf32> to vector<8x3xf32>
    %315 = arith.mulf %310, %314 : vector<8x3xf32>
    %316 = tpu.concatenate %315, %266, %282, %298, %272, %288, %304 in 1 : vector<8x3xf32>, vector<8x2xf32>, vector<8x2xf32>, vector<8x2xf32>, vector<8x2xf32>, vector<8x2xf32>, vector<8x2xf32> -> vector<8x15xf32>
    %c0_61 = arith.constant 0 : index
    %c0_62 = arith.constant 0 : index
    %317 = vector.load %arg4[%c0_61, %c0_62] : memref<8x15xf32, #tpu.memory_space<vmem>>, vector<8x15xf32>
    tpu.vector_store %arg4[%c0_61, %c0_62], %316 {strides = array<i32>} : memref<8x15xf32, #tpu.memory_space<vmem>>, vector<8x15xf32>,
    return
  }
}

</mosaic_0001>

<bundles_post_ra>
// kernel: tpu_custom_call.1
= control target key start
LH: loop header
LB: loop body
LE: loop exit
PB: predicated region body
PF: predicated region fallthrough
CT: control target
= control target key end

     0   :  { %9 = vsyncpa [#allocation3], 0  ;;  %s2454_s0 = inlined_call_operand.vmem [shape: f32[64,8], index: 0, kind: input, shape index: {}]   ;;  %s2455_s1 = inlined_call_operand.hbm [shape: f32[138,384], index: 1, kind: input, shape index: {}]   ;;  %s2456_s2 = inlined_call_operand.vmem [shape: f32[132,32], index: 2, kind: input, shape index: {}]   ;;  %s2457_s3 = inlined_call_operand.vmem [shape: f32[33,5], index: 3, kind: input, shape index: {}]   ;;  %s2458_s4 = inlined_call_operand.hbm [shape: f32[8,15], index: 4, kind: output, shape index: {}]  }
   0x1   :  { %10 = vsyncpa [#allocation4], 0  ;;  %s17_s17 = sshll.u32 %s2455_s1, 4  ;;  %s1573_s18 = smov [#allocation2]   ;;  %s18_s17 = int_to_ptr.hbm [resolvable:$true] %s17_s17 }
   0x2   :  { %s19_s19 = sshll.u32 %s1573_s18, 4  ;;  %s1574_s20 = smov 384   ;;  %s20_s19 = int_to_ptr.vmem [resolvable:$true] %s19_s19 }
   0x3   :  { %s1575_s21 = smov 24  }
   0x4   :  { %25 = dma.hbm_to_vmem [thread:$0]  %s18_s17, 6912, %s20_s19, [#allocation3], %s1574_s20, %s1574_s20, %s1575_s21  }
   0x5   :  { %1569 = dma.done.wait [#allocation3], 6912  }
   0x6   :  { %1570 = vsyncadd [#allocation3], 4294960384  ;;  %vm104_vm0 = vcmask 64512   ;;  %v1612_v0 = vld [vmem:[#allocation2 + $0x180] sm:$0xff]  ;;  %v1614_v2 = vld [vmem:[#allocation2 + $0x168] sm:$0xff]  ;;  %v1576_v38 = vmov 0.0  }
   0x7   :  { %v34_v1 = vld [vmem:[#allocation2] sm:$0xff]  ;;  %259 = vmatpush.msra.mxu3 %v1612_v0  ;;  %v1624_v4 = vld [vmem:[#allocation2 + $0x150] sm:$0xff]  ;;  %v1627_v5 = vld [vmem:[#allocation2 + $0x138] sm:$0xff]  ;;  %s1578_s27 = smov 2   ;;  %s1579_s28 = smov 4  }
   0x8   :  { %144 = vmatpush.msra.mxu0 %v34_v1  ;;  %v1620_v3 = vld [vmem:[%s2454_s0] sm:$0xff]  ;;  %v1630_v6 = vld [vmem:[#allocation2 + $0x190] sm:$0xff]  ;;  %v1639_v8 = vld [vmem:[%s2454_s0 + $0x8] sm:$0xff]  ;;  %s1581_s29 = smov 8   ;;  %s1582_s30 = smov 10  }
   0x9   :  { %1327 = vmatmul.msk.f32.vlgmr.msra.gmra.mxu0 %vm104_vm0, %v1620_v3  ;;  %260 = vmatpush.msra.mxu3 %v1614_v2  ;;  %v1632_v7 = vld [vmem:[#allocation2 + $0x120] sm:$0xff]  ;;  %v1641_v9 = vld [vmem:[#allocation2 + $0x178] sm:$0xff]  ;;  %v1643_v10 = vld [vmem:[#allocation2 + $0x108] sm:$0xff]  ;;  %s1583_s5 = smov [#allocation5]   ;;  %s1317_s9 = sshll.u32 %s2458_s4, 4  ;;  %s1318_s9 = int_to_ptr.hbm [resolvable:$true] %s1317_s9 }
   0xa   :  { %299 = vmatpush.msrb.mxu0 %v1630_v6  ;;  %v1646_v11 = vld [vmem:[#allocation2 + $0x160] sm:$0xff]  ;;  %v1651_v12 = vld [vmem:[#allocation2 + $0xf0] sm:$0xff]  ;;  %v1653_v13 = vld [vmem:[#allocation2 + $0x148] sm:$0xff]  ;;  %s1315_s6 = sshll.u32 %s1583_s5, 4  ;;  %s1316_s6 = int_to_ptr.vmem [resolvable:$true] %s1315_s6 }
   0xb   :  { %261 = vmatpush.msra.mxu3 %v1624_v4  ;;  %v1657_v14 = vld [vmem:[#allocation2 + $0xd8] sm:$0xff]  ;;  %v1659_v15 = vld [vmem:[#allocation2 + $0x130] sm:$0xff]  ;;  %v1663_v16 = vld [vmem:[#allocation2 + $0xc0] sm:$0xff] }
   0xc   :  { %300 = vmatpush.msrb.mxu0 %v1641_v9  ;;  %v1669_v17 = vld [vmem:[%s2454_s0 + $0x10] sm:$0xff]  ;;  %v1672_v18 = vld [vmem:[#allocation2 + $0x118] sm:$0xff]  ;;  %v1674_v19 = vld [vmem:[#allocation2 + $0xa8] sm:$0xff] }
   0xd   :  { %262 = vmatpush.msra.mxu3 %v1627_v5  ;;  %v1678_v20 = vld [vmem:[#allocation2 + $0x100] sm:$0xff]  ;;  %v1682_v21 = vld [vmem:[#allocation2 + $0x90] sm:$0xff]  ;;  %v1686_v22 = vld [vmem:[#allocation2 + $0xe8] sm:$0xff] }
   0xe   :  { %301 = vmatpush.msrb.mxu0 %v1646_v11  ;;  %v1688_v23 = vld [vmem:[#allocation2 + $0x78] sm:$0xff]  ;;  %v1692_v24 = vld [vmem:[#allocation2 + $0xd0] sm:$0xff]  ;;  %v1694_v25 = vld [vmem:[#allocation2 + $0x60] sm:$0xff] }
   0xf   :  { %263 = vmatpush.msra.mxu3 %v1632_v7  ;;  %v1700_v26 = vld [vmem:[%s2454_s0 + $0x18] sm:$0xff]  ;;  %v1705_v28 = vld [vmem:[#allocation2 + $0x48] sm:$0xff]  ;;  %v1709_v29 = vld [vmem:[#allocation2 + $0xa0] sm:$0xff] }
  0x10   :  { %302 = vmatpush.msrb.mxu0 %v1653_v13  ;;  %v1703_v27 = vld [vmem:[#allocation2 + $0xb8] sm:$0xff]  ;;  %2483 = vst [vmem:[#allocation8_spill] sm:$0xff] %v1705_v28  ;;  %v1713_v30 = vld [vmem:[#allocation2 + $0x30] sm:$0xff]  ;;  %v1717_v31 = vld [vmem:[#allocation2 + $0x88] sm:$0xff] }
  0x11   :  { %1328 = vmatmul.msk.f32.gmra.mxu0 %vm104_vm0, %v1639_v8  ;;  %264 = vmatpush.msra.mxu3 %v1643_v10  ;;  %2484 = vst [vmem:[#allocation9_spill] sm:$0xff] %v1713_v30  ;;  %v1719_v32 = vld [vmem:[#allocation2 + $0x18] sm:$0xff]  ;;  %v1723_v33 = vld [vmem:[#allocation2 + $0x70] sm:$0xff]  ;;  %v1725_v34 = vld [vmem:[#allocation2 + $0x188] sm:$0xff] }
  0x12   :  { %303 = vmatpush.msrb.mxu0 %v1659_v15  ;;  %2485 = vst [vmem:[#allocation10_spill] sm:$0xff] %v1719_v32  ;;  %v1731_v35 = vld [vmem:[%s2454_s0 + $0x20] sm:$0xff]  ;;  %v36_v36 = vld [vmem:[#allocation2 + $0x10] sm:$0xff]  ;;  %v1734_v37 = vld [vmem:[#allocation2 + $0x58] sm:$0xff] }
  0x13   :  { %265 = vmatpush.msra.mxu3 %v1651_v12  ;;  %2486 = vst [vmem:[#allocation11_spill] sm:$0xff] %v1734_v37  ;;  %v1737_v39 = vld [vmem:[#allocation2 + $0x170] sm:$0xff]  ;;  %226 = vmatpush.msra.mxu2 %v36_v36  ;;  %v1739_v40 = vld [vmem:[#allocation2 + $0x40] sm:$0xff]  ;;  %v35_v41 = vld [vmem:[#allocation2 + $0x8] sm:$0xff] }
  0x14   :  { %304 = vmatpush.msrb.mxu0 %v1672_v18  ;;  %2487 = vst [vmem:[#allocation12_spill] sm:$0xff] %v1739_v40  ;;  %v1745_v42 = vld [vmem:[#allocation2 + $0x158] sm:$0xff]  ;;  %1343 = vmatmul.msk.f32.vlgmr.msra.gmra.mxu2 %vm104_vm0, %v1620_v3  ;;  %v1749_v43 = vld [vmem:[#allocation2 + $0x28] sm:$0xff]  ;;  %v1753_v44 = vld [vmem:[#allocation2 + $0x140] sm:$0xff] }
  0x15   :  { %266 = vmatpush.msra.mxu3 %v1657_v14  ;;  %2488 = vst [vmem:[#allocation13_spill] sm:$0xff] %v1749_v43  ;;  %185 = vmatpush.msra.mxu1 %v35_v41  ;;  %v1758_v45 = vld [vmem:[#allocation2 + $0x128] sm:$0xff]  ;;  %v1770_v47 = vld [vmem:[#allocation2 + $0x110] sm:$0xff]  ;;  %v1778_v48 = vld [vmem:[#allocation2 + $0xf8] sm:$0xff] }
  0x16   :  { %305 = vmatpush.msrb.mxu0 %v1678_v20  ;;  %386 = vmatpush.msrb.mxu2 %v1725_v34  ;;  %v1767_v46 = vld [vmem:[%s2454_s0 + $0x28] sm:$0xff]  ;;  %v1784_v49 = vld [vmem:[#allocation2 + $0xe0] sm:$0xff]  ;;  %v1799_v51 = vld [vmem:[%s2454_s0 + $0x30] sm:$0xff] }
  0x17   :  { %267 = vmatpush.msra.mxu3 %v1663_v16  ;;  %1335 = vmatmul.msk.f32.vlgmr.msra.gmra.mxu1 %vm104_vm0, %v1620_v3  ;;  %v1790_v50 = vld [vmem:[#allocation2 + $0xc8] sm:$0xff]  ;;  %v1802_v52 = vld [vmem:[#allocation2 + $0xb0] sm:$0xff]  ;;  %v1810_v53 = vld [vmem:[#allocation2 + $0x98] sm:$0xff] }
  0x18   :  { %306 = vmatpush.msrb.mxu0 %v1686_v22  ;;  %387 = vmatpush.msrb.mxu2 %v1737_v39  ;;  %v1816_v54 = vld [vmem:[#allocation2 + $0x80] sm:$0xff]  ;;  %v1822_v55 = vld [vmem:[#allocation2 + $0x68] sm:$0xff]  ;;  %v1831_v56 = vld [vmem:[%s2454_s0 + $0x38] sm:$0xff] }
  0x19   :  { %1329 = vmatmul.msk.f32.gmra.mxu0 %vm104_vm0, %v1669_v17  ;;  %268 = vmatpush.msra.mxu3 %v1674_v19  ;;  %2489 = vst [vmem:[#allocation14_spill] sm:$0xff] %v1822_v55  ;;  %v1834_v57 = vld [vmem:[#allocation2 + $0x50] sm:$0xff]  ;;  %v1842_v58 = vld [vmem:[#allocation2 + $0x38] sm:$0xff]  ;;  %v1848_v59 = vld [vmem:[#allocation2 + $0x20] sm:$0xff] }
  0x1a   :  { %307 = vmatpush.msrb.mxu0 %v1692_v24  ;;  %366 = vmatpush.msrb.mxu1 %v1612_v0  ;;  %2490 = vst [vmem:[#allocation15_spill] sm:$0xff] %v1834_v57  ;;  %v86_v61 = vld [vmem:[#allocation2 + $0x198] ss:$8 sm:$0x7] }
  0x1b   :  { %269 = vmatpush.msra.mxu3 %v1682_v21  ;;  %388 = vmatpush.msrb.mxu2 %v1745_v42  ;;  %2491 = vst [vmem:[#allocation16_spill] sm:$0xff] %v1842_v58  ;;  %v98_v62 = vperm.slane %v86_v61, 0 }
  0x1c   :  { %308 = vmatpush.msrb.mxu0 %v1703_v27  ;;  %367 = vmatpush.msrb.mxu1 %v1614_v2  ;;  %2492 = vst [vmem:[#allocation17_spill] sm:$0xff] %v1848_v59 }
  0x1d   :  { %270 = vmatpush.msra.mxu3 %v1688_v23  ;;  %1344 = vmatmul.msk.f32.gmra.mxu2 %vm104_vm0, %v1639_v8 }
  0x1e   :  { %309 = vmatpush.msrb.mxu0 %v1709_v29  ;;  %368 = vmatpush.msrb.mxu1 %v1624_v4 }
  0x1f   :  { %271 = vmatpush.msra.mxu3 %v1694_v25  ;;  %389 = vmatpush.msrb.mxu2 %v1753_v44 }
  0x20   :  { %310 = vmatpush.msrb.mxu0 %v1717_v31  ;;  %369 = vmatpush.msrb.mxu1 %v1627_v5 }
  0x21   :  { %1330 = vmatmul.msk.f32.gmra.mxu0 %vm104_vm0, %v1700_v26  ;;  %272 = vmatpush.msra.mxu3 %v1705_v28 }
  0x22   :  { %311 = vmatpush.msrb.mxu0 %v1723_v33  ;;  %1336 = vmatmul.msk.f32.gmra.mxu1 %vm104_vm0, %v1639_v8 }
  0x23   :  { %273 = vmatpush.msra.mxu3 %v1713_v30  ;;  %390 = vmatpush.msrb.mxu2 %v1758_v45 }
  0x24   :  { %312 = vmatpush.msrb.mxu0 %v1734_v37  ;;  %370 = vmatpush.msrb.mxu1 %v1632_v7 }
  0x25   :  { %274 = vmatpush.msra.mxu3 %v1719_v32  ;;  %391 = vmatpush.msrb.mxu2 %v1770_v47 }
  0x26   :  { %275 = vmatmul.f32.vlgmr.msra.gmra.mxu3 %v1576_v38  ;;  %313 = vmatpush.msrb.mxu0 %v1739_v40 }
  0x27   :  { %279 = vmatpush.msrb.mxu3 %v1725_v34  ;;  %371 = vmatpush.msrb.mxu1 %v1643_v10 }
  0x28   :  { %314 = vmatpush.msrb.mxu0 %v1749_v43  ;;  %1345 = vmatmul.msk.f32.gmra.mxu2 %vm104_vm0, %v1669_v17 }
  0x29   :  { %1331 = vmatmul.msk.f32.gmra.mxu0 %vm104_vm0, %v1731_v35  ;;  %280 = vmatpush.msrb.mxu3 %v1737_v39 }
  0x2a   :  { %473 = vmatpush.msra.mxu0 %v1612_v0  ;;  %372 = vmatpush.msrb.mxu1 %v1651_v12 }
  0x2b   :  { %281 = vmatpush.msrb.mxu3 %v1745_v42  ;;  %392 = vmatpush.msrb.mxu2 %v1778_v48 }
  0x2c   :  { %474 = vmatpush.msra.mxu0 %v1614_v2  ;;  %373 = vmatpush.msrb.mxu1 %v1657_v14 }
  0x2d   :  { %282 = vmatpush.msrb.mxu3 %v1753_v44  ;;  %1337 = vmatmul.msk.f32.gmra.mxu1 %vm104_vm0, %v1669_v17 }
  0x2e   :  { %475 = vmatpush.msra.mxu0 %v1624_v4  ;;  %393 = vmatpush.msrb.mxu2 %v1784_v49 }
  0x2f   :  { %283 = vmatpush.msrb.mxu3 %v1758_v45  ;;  %374 = vmatpush.msrb.mxu1 %v1663_v16 }
  0x30   :  { %476 = vmatpush.msra.mxu0 %v1627_v5  ;;  %394 = vmatpush.msrb.mxu2 %v1790_v50 }
  0x31   :  { %1332 = vmatmul.msk.f32.gmra.mxu0 %vm104_vm0, %v1767_v46  ;;  %284 = vmatpush.msrb.mxu3 %v1770_v47 }
  0x32   :  { %477 = vmatpush.msra.mxu0 %v1632_v7  ;;  %375 = vmatpush.msrb.mxu1 %v1674_v19 }
  0x33   :  { %285 = vmatpush.msrb.mxu3 %v1778_v48  ;;  %1346 = vmatmul.msk.f32.gmra.mxu2 %vm104_vm0, %v1700_v26 }
  0x34   :  { %395 = vmatpush.msrb.mxu2 %v1802_v52  ;;  %376 = vmatpush.msrb.mxu1 %v1682_v21 }
  0x35   :  { %286 = vmatpush.msrb.mxu3 %v1784_v49  ;;  %478 = vmatpush.msra.mxu0 %v1643_v10 }
  0x36   :  { %396 = vmatpush.msrb.mxu2 %v1810_v53  ;;  %1338 = vmatmul.msk.f32.gmra.mxu1 %vm104_vm0, %v1700_v26 }
  0x37   :  { %287 = vmatpush.msrb.mxu3 %v1790_v50  ;;  %479 = vmatpush.msra.mxu0 %v1651_v12 }
  0x38   :  { %377 = vmatpush.msrb.mxu1 %v1688_v23  ;;  %397 = vmatpush.msrb.mxu2 %v1816_v54 }
  0x39   :  { %1333 = vmatmul.msk.f32.gmra.mxu0 %vm104_vm0, %v1799_v51  ;;  %288 = vmatpush.msrb.mxu3 %v1802_v52 }
  0x3a   :  { %378 = vmatpush.msrb.mxu1 %v1694_v25  ;;  %398 = vmatpush.msrb.mxu2 %v1822_v55 }
  0x3b   :  { %289 = vmatpush.msrb.mxu3 %v1810_v53  ;;  %1347 = vmatmul.msk.f32.gmra.mxu2 %vm104_vm0, %v1731_v35 }
  0x3c   :  { %379 = vmatpush.msrb.mxu1 %v1705_v28  ;;  %480 = vmatpush.msra.mxu0 %v1657_v14 }
  0x3d   :  { %290 = vmatpush.msrb.mxu3 %v1816_v54  ;;  %399 = vmatpush.msrb.mxu2 %v1834_v57 }
  0x3e   :  { %1339 = vmatmul.msk.f32.gmra.mxu1 %vm104_vm0, %v1731_v35  ;;  %481 = vmatpush.msra.mxu0 %v1663_v16  ;;  %v88_v35 = vld [vmem:[#allocation2 + $0x199] ss:$8 sm:$0x7] }
  0x3f   :  { %291 = vmatpush.msrb.mxu3 %v1822_v55  ;;  %380 = vmatpush.msrb.mxu1 %v1713_v30  ;;  %v1983_v41 = vperm.slane %v88_v35, 0 }
  0x40   :  { %400 = vmatpush.msrb.mxu2 %v1842_v58  ;;  %482 = vmatpush.msra.mxu0 %v1674_v19 }
  0x41   :  { %1334 = vmatmul.msk.f32.gmra.mxu0 %vm104_vm0, %v1831_v56  ;;  %292 = vmatpush.msrb.mxu3 %v1834_v57  ;;  %2497 = vst [vmem:[#allocation22_spill] sm:$0xff] %v1983_v41 }
  0x42   :  { %381 = vmatpush.msrb.mxu1 %v1719_v32  ;;  %401 = vmatpush.msrb.mxu2 %v1848_v59 }
  0x43   :  { %293 = vmatpush.msrb.mxu3 %v1842_v58  ;;  %1348 = vmatmul.msk.f32.gmra.mxu2 %vm104_vm0, %v1767_v46 }
  0x44   :  { %493 = vmatpush.msra.mxu1 %v1725_v34  ;;  %513 = vmatpush.msra.mxu2 %v1630_v6 }
  0x45   :  { %294 = vmatpush.msrb.mxu3 %v1848_v59  ;;  %483 = vmatpush.msra.mxu0 %v1682_v21 }
  0x46   :  { %295 = vmatmul.f32.vlgmr.msrb.gmra.mxu3 %v1576_v38  ;;  %494 = vmatpush.msra.mxu1 %v1737_v39 }
  0x47   :  { %406 = vmatpush.msra.mxu3 %v1630_v6  ;;  %1340 = vmatmul.msk.f32.gmra.mxu1 %vm104_vm0, %v1767_v46 }
  0x48   :  { %514 = vmatpush.msra.mxu2 %v1641_v9  ;;  %495 = vmatpush.msra.mxu1 %v1745_v42 }
  0x49   :  { %315 = vmatmul.f32.vlgmr.msrb.gmra.mxu0 %v1576_v38  ;;  %407 = vmatpush.msra.mxu3 %v1641_v9 }
  0x4a   :  { %515 = vmatpush.msra.mxu2 %v1646_v11  ;;  %484 = vmatpush.msra.mxu0 %v1688_v23 }
  0x4b   :  { %408 = vmatpush.msra.mxu3 %v1646_v11  ;;  %496 = vmatpush.msra.mxu1 %v1753_v44 }
  0x4c   :  { %1349 = vmatmul.msk.f32.gmra.mxu2 %vm104_vm0, %v1799_v51  ;;  %485 = vmatpush.msra.mxu0 %v1694_v25 }
  0x4d   :  { %409 = vmatpush.msra.mxu3 %v1653_v13  ;;  %516 = vmatpush.msra.mxu2 %v1653_v13 }
  0x4e   :  { %497 = vmatpush.msra.mxu1 %v1758_v45  ;;  %486 = vmatpush.msra.mxu0 %v1705_v28 }
  0x4f   :  { %410 = vmatpush.msra.mxu3 %v1659_v15  ;;  %517 = vmatpush.msra.mxu2 %v1659_v15 }
  0x50   :  { %1341 = vmatmul.msk.f32.gmra.mxu1 %vm104_vm0, %v1799_v51  ;;  %487 = vmatpush.msra.mxu0 %v1713_v30 }
  0x51   :  { %411 = vmatpush.msra.mxu3 %v1672_v18  ;;  %498 = vmatpush.msra.mxu1 %v1770_v47 }
  0x52   :  { %518 = vmatpush.msra.mxu2 %v1672_v18  ;;  %488 = vmatpush.msra.mxu0 %v1719_v32 }
  0x53   :  { %412 = vmatpush.msra.mxu3 %v1678_v20  ;;  %499 = vmatpush.msra.mxu1 %v1778_v48 }
  0x54   :  { %1350 = vmatmul.msk.f32.gmra.mxu2 %vm104_vm0, %v1831_v56  ;;  %600 = vmatpush.msrb.mxu0 %v1725_v34 }
  0x55   :  { %413 = vmatpush.msra.mxu3 %v1686_v22  ;;  %519 = vmatpush.msra.mxu2 %v1678_v20 }
  0x56   :  { %500 = vmatpush.msra.mxu1 %v1784_v49  ;;  %601 = vmatpush.msrb.mxu0 %v1737_v39 }
  0x57   :  { %414 = vmatpush.msra.mxu3 %v1692_v24  ;;  %520 = vmatpush.msra.mxu2 %v1686_v22 }
  0x58   :  { %1342 = vmatmul.msk.f32.gmra.mxu1 %vm104_vm0, %v1831_v56  ;;  %602 = vmatpush.msrb.mxu0 %v1745_v42 }
  0x59   :  { %415 = vmatpush.msra.mxu3 %v1703_v27  ;;  %501 = vmatpush.msra.mxu1 %v1790_v50 }
  0x5a   :  { %521 = vmatpush.msra.mxu2 %v1692_v24  ;;  %603 = vmatpush.msrb.mxu0 %v1753_v44 }
  0x5b   :  { %416 = vmatpush.msra.mxu3 %v1709_v29  ;;  %502 = vmatpush.msra.mxu1 %v1802_v52 }
  0x5c   :  { %522 = vmatpush.msra.mxu2 %v1703_v27  ;;  %604 = vmatpush.msrb.mxu0 %v1758_v45 }
  0x5d   :  { %417 = vmatpush.msra.mxu3 %v1717_v31  ;;  %503 = vmatpush.msra.mxu1 %v1810_v53 }
  0x5e   :  { %523 = vmatpush.msra.mxu2 %v1709_v29  ;;  %605 = vmatpush.msrb.mxu0 %v1770_v47 }
  0x5f   :  { %418 = vmatpush.msra.mxu3 %v1723_v33  ;;  %504 = vmatpush.msra.mxu1 %v1816_v54 }
  0x60   :  { %524 = vmatpush.msra.mxu2 %v1717_v31  ;;  %606 = vmatpush.msrb.mxu0 %v1778_v48 }
  0x61   :  { %419 = vmatpush.msra.mxu3 %v1734_v37  ;;  %505 = vmatpush.msra.mxu1 %v1822_v55 }
  0x62   :  { %525 = vmatpush.msra.mxu2 %v1723_v33  ;;  %607 = vmatpush.msrb.mxu0 %v1784_v49 }
  0x63   :  { %420 = vmatpush.msra.mxu3 %v1739_v40  ;;  %506 = vmatpush.msra.mxu1 %v1834_v57 }
  0x64   :  { %526 = vmatpush.msra.mxu2 %v1734_v37  ;;  %608 = vmatpush.msrb.mxu0 %v1790_v50 }
  0x65   :  { %421 = vmatpush.msra.mxu3 %v1749_v43  ;;  %507 = vmatpush.msra.mxu1 %v1842_v58 }
  0x66   :  { %527 = vmatpush.msra.mxu2 %v1739_v40  ;;  %609 = vmatpush.msrb.mxu0 %v1802_v52 }
  0x67   :  { %580 = vmatpush.msrb.mxu3 %v1612_v0  ;;  %508 = vmatpush.msra.mxu1 %v1848_v59 }
  0x68   :  { %528 = vmatpush.msra.mxu2 %v1749_v43  ;;  %610 = vmatpush.msrb.mxu0 %v1810_v53 }
  0x69   :  { %581 = vmatpush.msrb.mxu3 %v1614_v2 }
  0x6a   :  { %611 = vmatpush.msrb.mxu0 %v1816_v54 }
  0x6b   :  { %582 = vmatpush.msrb.mxu3 %v1624_v4 }
  0x6c   :  { %612 = vmatpush.msrb.mxu0 %v1822_v55 }
  0x6d   :  { %583 = vmatpush.msrb.mxu3 %v1627_v5 }
  0x6e   :  { %613 = vmatpush.msrb.mxu0 %v1834_v57 }
  0x6f   :  { %584 = vmatpush.msrb.mxu3 %v1632_v7 }
  0x70   :  { %614 = vmatpush.msrb.mxu0 %v1842_v58  ;;  %v1992_v58 = vperm.slane %v86_v61, 1 }
  0x71   :  { %585 = vmatpush.msrb.mxu3 %v1643_v10 }
  0x72   :  { %615 = vmatpush.msrb.mxu0 %v1848_v59  ;;  %2501 = vst [vmem:[#allocation26_spill] sm:$0xff] %v1992_v58 }
  0x73   :  { %586 = vmatpush.msrb.mxu3 %v1651_v12 }
  0x75   :  { %587 = vmatpush.msrb.mxu3 %v1657_v14 }
  0x77   :  { %588 = vmatpush.msrb.mxu3 %v1663_v16 }
  0x79   :  { %589 = vmatpush.msrb.mxu3 %v1674_v19 }
  0x7b   :  { %590 = vmatpush.msrb.mxu3 %v1682_v21 }
  0x7d   :  { %591 = vmatpush.msrb.mxu3 %v1688_v23 }
  0x7f   :  { %592 = vmatpush.msrb.mxu3 %v1694_v25 }
  0x81   :  { %593 = vmatpush.msrb.mxu3 %v1705_v28 }
  0x83   :  { %594 = vmatpush.msrb.mxu3 %v1713_v30 }
  0x85   :  { %595 = vmatpush.msrb.mxu3 %v1719_v32 }
  0x86   :  { %v146_v60 = vpop.f32.mrf.mxu0 }
  0x87   :  { %v147_v51 = vadd.f32 %v146_v60, %v98_v62 }
  0x8e   :  { %v149_v63 = vpop.f32.mrf.mxu0 }
  0x8f   :  { %v1975_v1 = vadd.f32 %v149_v63, %v98_v62 }
  0x91   :  { %2493 = vst [vmem:[#allocation18_spill] sm:$0xff] %v1975_v1 }
  0x94   :  { %v187_v60 = vpop.f32.mrf.mxu1 }
  0x96   :  { %v152_v3 = vpop.f32.mrf.mxu0 }
  0x97   :  { %v1977_v8 = vadd.f32 %v152_v3, %v98_v62 }
  0x99   :  { %2494 = vst [vmem:[#allocation19_spill] sm:$0xff] %v1977_v8 }
  0x9e   :  { %v155_v17 = vpop.f32.mrf.mxu0 }
  0x9f   :  { %v1979_v26 = vadd.f32 %v155_v17, %v98_v62 }
  0xa1   :  { %2495 = vst [vmem:[#allocation20_spill] sm:$0xff] %v1979_v26 }
  0xa6   :  { %v158_v36 = vpop.f32.mrf.mxu0 }
  0xa7   :  { %v1981_v38 = vadd.f32 %v158_v36, %v98_v62 }
  0xa9   :  { %2496 = vst [vmem:[#allocation21_spill] sm:$0xff] %v1981_v38  ;;  %v276_v46 = vpop.f32.mrf.mxu3 }
  0xaa   :  { %v277_v56 = vadd.f32 %v276_v46, %v1983_v41  ;;  %v1994_v46 = vperm.slane %v88_v35, 1 }
  0xac   :  { %v319_v59 = vadd.f32 %v277_v56, %v147_v51  ;;  %2502 = vst [vmem:[#allocation27_spill] sm:$0xff] %v1994_v46 }
  0xae   :  { %v161_v32 = vpop.f32.mrf.mxu0  ;;  %v1351_v63 = vmul.f32 -1.442695, %v319_v59 }
  0xaf   :  { %v1986_v1 = vadd.f32 %v161_v32, %v98_v62  ;;  %v188_v32 = vadd.f32 %v187_v60, %v1992_v58 }
  0xb0   :  { %1383 = vpow2.f32 %v1351_v63 }
  0xb1   :  { %2498 = vst [vmem:[#allocation23_spill] sm:$0xff] %v1986_v1 }
  0xb6   :  { %v164_v3 = vpop.f32.mrf.mxu0  ;;  %v1384_v17 = vpop.eup %1383 }
  0xb7   :  { %v1988_v8 = vadd.f32 %v164_v3, %v98_v62  ;;  %v323_v26 = vadd.f32 1.0, %v1384_v17 }
  0xb9   :  { %2499 = vst [vmem:[#allocation24_spill] sm:$0xff] %v1988_v8  ;;  %1385 = vrcp.f32 %v323_v26  ;;  %vm329_vm2 = vweird.f32 %v323_v26 }
  0xbe   :  { %v167_v43 = vpop.f32.mrf.mxu0 }
  0xbf   :  { %v1990_v36 = vadd.f32 %v167_v43, %v98_v62  ;;  %v1386_v38 = vpop.eup %1385  ;;  %v335_v43 = vand.u32 2147483648, %v323_v26  ;;  %v1998_v62 = vperm.slane %v88_v35, 2 }
  0xc0   :  { %v325_v51 = vmul.f32 %v1386_v38, %v323_v26  ;;  %vm330_vm1 = vweird.f32 %v1386_v38 }
  0xc1   :  { %2500 = vst [vmem:[#allocation25_spill] sm:$0xff] %v1990_v36  ;;  %v333_v36 = vand.u32 2147483647, %v323_v26  ;;  %vm331_vm3 = vmor %vm329_vm2, %vm330_vm1  ;;  %v336_v58 = vor.u32 1.1754944e-38, %v335_v43 }
  0xc2   :  { %v326_v63 = vsub.f32 1.0, %v325_v51  ;;  %v2001_v51 = vperm.slane %v86_v61, 2 }
  0xc3   :  { %vm334_vm4 = vcmp.eq.f32.partialorder %v333_v36, 8.507059e+37 }
  0xc4   :  { %v327_v17 = vmul.f32 %v1386_v38, %v326_v63 }
  0xc6   :  { %v328_v1 = vadd.f32 %v1386_v38, %v327_v17  ;;  %v316_v30 = vpop.f32.mrf.mxu0 }
  0xc8   :  { %v332_v40 = vsel %vm331_vm3, %v1386_v38, %v328_v1 }
  0xc9   :  { %v296_v59 = vpop.f32.mrf.mxu3 }
  0xca   :  { %v297_v56 = vadd.f32 %v296_v59, %v1994_v46  ;;  %v317_v59 = vadd.f32 %v316_v30, %v1998_v62 }
  0xcc   :  { %v339_v3 = vadd.f32 %v297_v56, %v188_v32  ;;  %v228_v32 = vpop.f32.mrf.mxu2 }
  0xcd   :  { %v229_v35 = vadd.f32 %v228_v32, %v2001_v51  ;;  %v2507_v32 = vld [vmem:[#allocation13_spill] sm:$0xff] }
  0xce   :  { %v1352_v8 = vmul.f32 -1.442695, %v339_v3 }
  0xd0   :  { %1387 = vpow2.f32 %v1352_v8  ;;  %v337_v8 = vsel %vm334_vm4, %v336_v58, %v332_v40 }
  0xd1   :  { %v359_v56 = vmul.f32 %v337_v8, %v317_v59  ;;  %v2506_v8 = vld [vmem:[#allocation16_spill] sm:$0xff] }
  0xd3   :  { %v360_v26 = vadd.f32 %v359_v56, %v229_v35  ;;  %v2508_v56 = vld [vmem:[#allocation10_spill] sm:$0xff]  ;;  %v2509_v35 = vld [vmem:[#allocation17_spill] sm:$0xff] }
  0xd6   :  { %v1388_v41 = vpop.eup %1387 }
  0xd7   :  { %v343_v60 = vadd.f32 1.0, %v1388_v41 }
  0xd9   :  { %1389 = vrcp.f32 %v343_v60  ;;  %v355_v46 = vand.u32 2147483648, %v343_v60  ;;  %v353_v1 = vand.u32 2147483647, %v343_v60  ;;  %vm349_vm6 = vweird.f32 %v343_v60 }
  0xda   :  { %1391 = vtanh.f32 %v360_v26 }
  0xdb   :  { %v356_v30 = vor.u32 1.1754944e-38, %v355_v46  ;;  %vm354_vm8 = vcmp.eq.f32.partialorder %v353_v1, 8.507059e+37  ;;  %v2504_v46 = vld [vmem:[#allocation12_spill] sm:$0xff] }
  0xdf   :  { %v1390_v63 = vpop.eup %1389 }
  0xe0   :  { %v345_v3 = vmul.f32 %v1390_v63, %v343_v60  ;;  %vm350_vm5 = vweird.f32 %v1390_v63  ;;  %v1392_v41 = vpop.eup %1391  ;;  %v2505_v60 = vld [vmem:[#allocation9_spill] sm:$0xff] }
  0xe1   :  { %vm351_vm7 = vmor %vm349_vm6, %vm350_vm5 }
  0xe2   :  { %v346_v17 = vsub.f32 1.0, %v345_v3  ;;  %v231_v3 = vpop.f32.mrf.mxu2 }
  0xe4   :  { %v347_v57 = vmul.f32 %v1390_v63, %v346_v17 }
  0xe6   :  { %v348_v38 = vadd.f32 %v1390_v63, %v347_v57  ;;  %v2503_v57 = vld [vmem:[#allocation15_spill] sm:$0xff] }
  0xe8   :  { %v352_v61 = vsel %vm351_vm7, %v1390_v63, %v348_v38  ;;  %v190_v63 = vpop.f32.mrf.mxu1 }
  0xe9   :  { %v357_v40 = vsel %vm354_vm8, %v356_v30, %v352_v61 }
  0xea   :  { %v362_v58 = vsub.f32 1.0, %v357_v40  ;;  %v364_v43 = vmul.f32 0.0, %v357_v40  ;;  %v2059_v17 = vpop.f32.mrf.mxu2 }
  0xeb   :  { %2511 = vst [vmem:[#allocation29_spill] sm:$0xff] %v2059_v17 }
  0xec   :  { %v363_v36 = vmul.f32 %v1392_v41, %v362_v58 }
  0xee   :  { %v2004_v59 = vadd.f32 %v364_v43, %v363_v36 }
  0xf0   :  { %382 = vmatmul.f32.vlgmr.msrb.gmra.mxu1 %v2004_v59  ;;  %402 = vmatmul.f32.vlgmr.msrb.gmra.mxu2 %v2004_v59  ;;  %v2057_v26 = vpop.f32.mrf.mxu1 }
  0xf1   :  { %422 = vmatmul.f32.vlgmr.msra.gmra.mxu3 %v2004_v59  ;;  %620 = vmatpush.msrb.mxu1 %v1630_v6  ;;  %2510 = vst [vmem:[#allocation28_spill] sm:$0xff] %v2057_v26 }
  0xf2   :  { %687 = vmatpush.msrb.mxu2 %v1612_v0  ;;  %707 = vmatpush.msra.mxu3 %v1725_v34  ;;  %v2063_v38 = vpop.f32.mrf.mxu2 }
  0xf3   :  { %621 = vmatpush.msrb.mxu1 %v1641_v9  ;;  %2513 = vst [vmem:[#allocation31_spill] sm:$0xff] %v2063_v38  ;;  %v2523_v38 = vld [vmem:[#allocation18_spill] sm:$0xff] }
  0xf4   :  { %688 = vmatpush.msrb.mxu2 %v1614_v2  ;;  %708 = vmatpush.msra.mxu3 %v1737_v39 }
  0xf5   :  { %622 = vmatpush.msrb.mxu1 %v1646_v11 }
  0xf6   :  { %689 = vmatpush.msrb.mxu2 %v1624_v4  ;;  %709 = vmatpush.msra.mxu3 %v1745_v42 }
  0xf7   :  { %623 = vmatpush.msrb.mxu1 %v1653_v13 }
  0xf8   :  { %690 = vmatpush.msrb.mxu2 %v1627_v5  ;;  %710 = vmatpush.msra.mxu3 %v1753_v44  ;;  %v2061_v1 = vpop.f32.mrf.mxu1 }
  0xf9   :  { %624 = vmatpush.msrb.mxu1 %v1659_v15  ;;  %2512 = vst [vmem:[#allocation30_spill] sm:$0xff] %v2061_v1  ;;  %v2522_v1 = vld [vmem:[#allocation22_spill] sm:$0xff] }
  0xfa   :  { %691 = vmatpush.msrb.mxu2 %v1632_v7  ;;  %711 = vmatpush.msra.mxu3 %v1758_v45  ;;  %v2067_v61 = vpop.f32.mrf.mxu2 }
  0xfb   :  { %625 = vmatpush.msrb.mxu1 %v1672_v18  ;;  %2515 = vst [vmem:[#allocation33_spill] sm:$0xff] %v2067_v61  ;;  %v2524_v61 = vld [vmem:[#allocation26_spill] sm:$0xff] }
  0xfc   :  { %692 = vmatpush.msrb.mxu2 %v1643_v10  ;;  %712 = vmatpush.msra.mxu3 %v1770_v47 }
  0xfd   :  { %626 = vmatpush.msrb.mxu1 %v1678_v20 }
  0xfe   :  { %693 = vmatpush.msrb.mxu2 %v1651_v12  ;;  %713 = vmatpush.msra.mxu3 %v1778_v48 }
  0xff   :  { %627 = vmatpush.msrb.mxu1 %v1686_v22 }
 0x100   :  { %694 = vmatpush.msrb.mxu2 %v1657_v14  ;;  %714 = vmatpush.msra.mxu3 %v1784_v49  ;;  %v2065_v30 = vpop.f32.mrf.mxu1 }
 0x101   :  { %628 = vmatpush.msrb.mxu1 %v1692_v24  ;;  %2514 = vst [vmem:[#allocation32_spill] sm:$0xff] %v2065_v30 }
 0x102   :  { %695 = vmatpush.msrb.mxu2 %v1663_v16  ;;  %715 = vmatpush.msra.mxu3 %v1790_v50  ;;  %v2071_v58 = vpop.f32.mrf.mxu2 }
 0x103   :  { %629 = vmatpush.msrb.mxu1 %v1703_v27  ;;  %2517 = vst [vmem:[#allocation35_spill] sm:$0xff] %v2071_v58 }
 0x104   :  { %696 = vmatpush.msrb.mxu2 %v1674_v19  ;;  %716 = vmatpush.msra.mxu3 %v1802_v52 }
 0x105   :  { %630 = vmatpush.msrb.mxu1 %v1709_v29 }
 0x106   :  { %697 = vmatpush.msrb.mxu2 %v1682_v21  ;;  %717 = vmatpush.msra.mxu3 %v1810_v53 }
 0x107   :  { %631 = vmatpush.msrb.mxu1 %v1717_v31 }
 0x108   :  { %698 = vmatpush.msrb.mxu2 %v1688_v23  ;;  %718 = vmatpush.msra.mxu3 %v1816_v54  ;;  %v2069_v40 = vpop.f32.mrf.mxu1 }
 0x109   :  { %632 = vmatpush.msrb.mxu1 %v1723_v33  ;;  %2516 = vst [vmem:[#allocation34_spill] sm:$0xff] %v2069_v40  ;;  %v2525_v40 = vld [vmem:[#allocation27_spill] sm:$0xff] }
 0x10a   :  { %699 = vmatpush.msrb.mxu2 %v1694_v25  ;;  %719 = vmatpush.msra.mxu3 %v1822_v55  ;;  %v2075_v36 = vpop.f32.mrf.mxu2 }
 0x10b   :  { %633 = vmatpush.msrb.mxu1 %v1734_v37  ;;  %2519 = vst [vmem:[#allocation37_spill] sm:$0xff] %v2075_v36 }
 0x10c   :  { %700 = vmatpush.msrb.mxu2 %v1705_v28  ;;  %720 = vmatpush.msra.mxu3 %v2503_v57 }
 0x10d   :  { %634 = vmatpush.msrb.mxu1 %v2504_v46 }
 0x10e   :  { %701 = vmatpush.msrb.mxu2 %v2505_v60  ;;  %721 = vmatpush.msra.mxu3 %v2506_v8  ;;  %v191_v8 = vadd.f32 %v190_v63, %v2524_v61 }
 0x10f   :  { %635 = vmatpush.msrb.mxu1 %v2507_v32 }
 0x110   :  { %702 = vmatpush.msrb.mxu2 %v2508_v56  ;;  %722 = vmatpush.msra.mxu3 %v2509_v35  ;;  %v2073_v41 = vpop.f32.mrf.mxu1 }
 0x111   :  { %2518 = vst [vmem:[#allocation36_spill] sm:$0xff] %v2073_v41 }
 0x112   :  { %v2079_v26 = vpop.f32.mrf.mxu2 }
 0x113   :  { %2521 = vst [vmem:[#allocation39_spill] sm:$0xff] %v2079_v26 }
 0x118   :  { %v2077_v43 = vpop.f32.mrf.mxu1 }
 0x119   :  { %2520 = vst [vmem:[#allocation38_spill] sm:$0xff] %v2077_v43 }
 0x16d   :  { %v383_v17 = vpop.f32.mrf.mxu1 }
 0x16e   :  { %v384_v35 = vadd.f32 %v383_v17, %v2522_v1 }
 0x170   :  { %v426_v56 = vadd.f32 %v384_v35, %v2523_v38 }
 0x172   :  { %v1353_v30 = vmul.f32 -1.442695, %v426_v56 }
 0x173   :  { %v403_v32 = vpop.f32.mrf.mxu2 }
 0x174   :  { %1393 = vpow2.f32 %v1353_v30  ;;  %v404_v58 = vadd.f32 %v403_v32, %v2525_v40  ;;  %v423_v30 = vpop.f32.mrf.mxu3 }
 0x176   :  { %v446_v60 = vadd.f32 %v404_v58, %v191_v8 }
 0x178   :  { %v1354_v41 = vmul.f32 -1.442695, %v446_v60 }
 0x17a   :  { %v1394_v46 = vpop.eup %1393  ;;  %1395 = vpow2.f32 %v1354_v41  ;;  %v232_v41 = vadd.f32 %v231_v3, %v2001_v51 }
 0x17b   :  { %v430_v36 = vadd.f32 1.0, %v1394_v46  ;;  %v424_v46 = vadd.f32 %v423_v30, %v1998_v62 }
 0x17d   :  { %1397 = vrcp.f32 %v430_v36  ;;  %v442_v35 = vand.u32 2147483648, %v430_v36  ;;  %v440_v38 = vand.u32 2147483647, %v430_v36  ;;  %vm436_vm10 = vweird.f32 %v430_v36 }
 0x17f   :  { %v443_v60 = vor.u32 1.1754944e-38, %v442_v35  ;;  %vm441_vm12 = vcmp.eq.f32.partialorder %v440_v38, 8.507059e+37 }
 0x180   :  { %v1396_v43 = vpop.eup %1395 }
 0x181   :  { %v450_v26 = vadd.f32 1.0, %v1396_v43 }
 0x183   :  { %v1398_v57 = vpop.eup %1397  ;;  %1399 = vrcp.f32 %v450_v26  ;;  %v460_v28 = vand.u32 2147483647, %v450_v26  ;;  %vm456_vm14 = vweird.f32 %v450_v26 }
 0x184   :  { %v432_v17 = vmul.f32 %v1398_v57, %v430_v36  ;;  %vm437_vm9 = vweird.f32 %v1398_v57 }
 0x185   :  { %vm438_vm11 = vmor %vm436_vm10, %vm437_vm9  ;;  %vm461_vm0 = vcmp.eq.f32.partialorder %v460_v28, 8.507059e+37 }
 0x186   :  { %v433_v1 = vsub.f32 1.0, %v432_v17 }
 0x188   :  { %v434_v56 = vmul.f32 %v1398_v57, %v433_v1  ;;  %v462_v1 = vand.u32 2147483648, %v450_v26 }
 0x189   :  { %v1400_v63 = vpop.eup %1399 }
 0x18a   :  { %v452_v61 = vmul.f32 %v1400_v63, %v450_v26  ;;  %v435_v32 = vadd.f32 %v1398_v57, %v434_v56  ;;  %vm457_vm13 = vweird.f32 %v1400_v63  ;;  %v463_v35 = vor.u32 1.1754944e-38, %v462_v1 }
 0x18b   :  { %vm458_vm15 = vmor %vm456_vm14, %vm457_vm13 }
 0x18c   :  { %v453_v8 = vsub.f32 1.0, %v452_v61  ;;  %v439_v58 = vsel %vm438_vm11, %v1398_v57, %v435_v32 }
 0x18d   :  { %v444_v43 = vsel %vm441_vm12, %v443_v60, %v439_v58 }
 0x18e   :  { %v466_v17 = vmul.f32 %v444_v43, %v424_v46  ;;  %v454_v40 = vmul.f32 %v1400_v63, %v453_v8 }
 0x190   :  { %v467_v37 = vadd.f32 %v466_v17, %v232_v41  ;;  %v455_v55 = vadd.f32 %v1400_v63, %v454_v40 }
 0x192   :  { %1401 = vtanh.f32 %v467_v37  ;;  %v459_v36 = vsel %vm458_vm15, %v1400_v63, %v455_v55 }
 0x193   :  { %v464_v61 = vsel %vm461_vm0, %v463_v35, %v459_v36 }
 0x194   :  { %v469_v56 = vsub.f32 1.0, %v464_v61  ;;  %v471_v3 = vmul.f32 %v464_v61, %v2004_v59  ;;  %v2541_v61 = vld [vmem:[#allocation29_spill] sm:$0xff] }
 0x198   :  { %v1402_v57 = vpop.eup %1401 }
 0x199   :  { %v470_v38 = vmul.f32 %v1402_v57, %v469_v56  ;;  %v235_v56 = vadd.f32 %v2541_v61, %v2001_v51 }
 0x19b   :  { %v2088_v30 = vadd.f32 %v471_v3, %v470_v38 }
 0x19d   :  { %489 = vmatmul.f32.vlgmr.msra.gmra.mxu0 %v2088_v30  ;;  %509 = vmatmul.f32.vlgmr.msra.gmra.mxu1 %v2088_v30 }
 0x19e   :  { %529 = vmatmul.f32.vlgmr.msra.gmra.mxu2 %v2088_v30  ;;  %727 = vmatpush.msra.mxu0 %v1630_v6  ;;  %v2530_v6 = vld [vmem:[#allocation12_spill] sm:$0xff] }
 0x19f   :  { %794 = vmatpush.msra.mxu1 %v1612_v0  ;;  %814 = vmatpush.msra.mxu2 %v1725_v34  ;;  %v2526_v0 = vld [vmem:[#allocation14_spill] sm:$0xff] }
 0x1a0   :  { %728 = vmatpush.msra.mxu0 %v1641_v9  ;;  %v2532_v9 = vld [vmem:[#allocation16_spill] sm:$0xff] }
 0x1a1   :  { %795 = vmatpush.msra.mxu1 %v1614_v2  ;;  %815 = vmatpush.msra.mxu2 %v1737_v39  ;;  %v2527_v2 = vld [vmem:[#allocation11_spill] sm:$0xff] }
 0x1a2   :  { %729 = vmatpush.msra.mxu0 %v1646_v11  ;;  %v2534_v11 = vld [vmem:[#allocation10_spill] sm:$0xff] }
 0x1a3   :  { %796 = vmatpush.msra.mxu1 %v1624_v4  ;;  %816 = vmatpush.msra.mxu2 %v1745_v42  ;;  %v2528_v4 = vld [vmem:[#allocation8_spill] sm:$0xff] }
 0x1a4   :  { %730 = vmatpush.msra.mxu0 %v1653_v13 }
 0x1a5   :  { %797 = vmatpush.msra.mxu1 %v1627_v5  ;;  %817 = vmatpush.msra.mxu2 %v1753_v44  ;;  %v2529_v5 = vld [vmem:[#allocation15_spill] sm:$0xff] }
 0x1a6   :  { %731 = vmatpush.msra.mxu0 %v1659_v15  ;;  %v2536_v15 = vld [vmem:[#allocation26_spill] sm:$0xff] }
 0x1a7   :  { %798 = vmatpush.msra.mxu1 %v1632_v7  ;;  %818 = vmatpush.msra.mxu2 %v1758_v45  ;;  %v2531_v7 = vld [vmem:[#allocation9_spill] sm:$0xff] }
 0x1a8   :  { %732 = vmatpush.msra.mxu0 %v1672_v18 }
 0x1a9   :  { %799 = vmatpush.msra.mxu1 %v1643_v10  ;;  %819 = vmatpush.msra.mxu2 %v1770_v47  ;;  %v2533_v10 = vld [vmem:[#allocation13_spill] sm:$0xff] }
 0x1aa   :  { %733 = vmatpush.msra.mxu0 %v1678_v20 }
 0x1ab   :  { %800 = vmatpush.msra.mxu1 %v1651_v12  ;;  %820 = vmatpush.msra.mxu2 %v1778_v48  ;;  %v2535_v12 = vld [vmem:[#allocation17_spill] sm:$0xff] }
 0x1ac   :  { %734 = vmatpush.msra.mxu0 %v1686_v22 }
 0x1ad   :  { %801 = vmatpush.msra.mxu1 %v1657_v14  ;;  %821 = vmatpush.msra.mxu2 %v1784_v49 }
 0x1ae   :  { %735 = vmatpush.msra.mxu0 %v1692_v24 }
 0x1af   :  { %802 = vmatpush.msra.mxu1 %v1663_v16  ;;  %822 = vmatpush.msra.mxu2 %v1790_v50  ;;  %v2537_v16 = vld [vmem:[#allocation28_spill] sm:$0xff] }
 0x1b0   :  { %736 = vmatpush.msra.mxu0 %v1703_v27  ;;  %v194_v18 = vadd.f32 %v2537_v16, %v2536_v15 }
 0x1b1   :  { %803 = vmatpush.msra.mxu1 %v1674_v19  ;;  %823 = vmatpush.msra.mxu2 %v1802_v52  ;;  %v2538_v19 = vld [vmem:[#allocation22_spill] sm:$0xff] }
 0x1b2   :  { %737 = vmatpush.msra.mxu0 %v1709_v29 }
 0x1b3   :  { %804 = vmatpush.msra.mxu1 %v1682_v21  ;;  %824 = vmatpush.msra.mxu2 %v1810_v53  ;;  %v2539_v21 = vld [vmem:[#allocation27_spill] sm:$0xff] }
 0x1b4   :  { %738 = vmatpush.msra.mxu0 %v1717_v31 }
 0x1b5   :  { %805 = vmatpush.msra.mxu1 %v1688_v23  ;;  %825 = vmatpush.msra.mxu2 %v1816_v54  ;;  %v2540_v23 = vld [vmem:[#allocation19_spill] sm:$0xff] }
 0x1b6   :  { %739 = vmatpush.msra.mxu0 %v1723_v33 }
 0x1b7   :  { %806 = vmatpush.msra.mxu1 %v1694_v25  ;;  %826 = vmatpush.msra.mxu2 %v2526_v0 }
 0x1b8   :  { %740 = vmatpush.msra.mxu0 %v2527_v2 }
 0x1b9   :  { %807 = vmatpush.msra.mxu1 %v2528_v4  ;;  %827 = vmatpush.msra.mxu2 %v2529_v5 }
 0x1ba   :  { %741 = vmatpush.msra.mxu0 %v2530_v6 }
 0x1bb   :  { %808 = vmatpush.msra.mxu1 %v2531_v7  ;;  %828 = vmatpush.msra.mxu2 %v2532_v9 }
 0x1bc   :  { %742 = vmatpush.msra.mxu0 %v2533_v10 }
 0x1bd   :  { %809 = vmatpush.msra.mxu1 %v2534_v11  ;;  %829 = vmatpush.msra.mxu2 %v2535_v12 }
 0x21a   :  { %v490_v13 = vpop.f32.mrf.mxu0  ;;  %v510_v14 = vpop.f32.mrf.mxu1 }
 0x21b   :  { %v491_v20 = vadd.f32 %v490_v13, %v2538_v19  ;;  %v511_v22 = vadd.f32 %v510_v14, %v2539_v21 }
 0x21d   :  { %v533_v24 = vadd.f32 %v491_v20, %v2540_v23  ;;  %v553_v25 = vadd.f32 %v511_v22, %v194_v18  ;;  %v2155_v18 = vld [vmem:[#allocation2 + $0x190] sm:$0xff]  ;;  %v2158_v20 = vld [vmem:[#allocation2 + $0x180] sm:$0xff]  ;;  %v2161_v22 = vld [vmem:[#allocation2 + $0x188] sm:$0xff] }
 0x21e   :  { %v2167_v23 = vld [vmem:[#allocation2 + $0x168] sm:$0xff] }
 0x21f   :  { %v1355_v27 = vmul.f32 -1.442695, %v533_v24  ;;  %v1356_v28 = vmul.f32 -1.442695, %v553_v25  ;;  %v2171_v24 = vld [vmem:[#allocation2 + $0x160] sm:$0xff]  ;;  %v2174_v25 = vld [vmem:[#allocation2 + $0x150] sm:$0xff] }
 0x221   :  { %1403 = vpow2.f32 %v1355_v27  ;;  %v530_v46 = vpop.f32.mrf.mxu2  ;;  %v2178_v27 = vld [vmem:[#allocation2 + $0x148] sm:$0xff] }
 0x222   :  { %1405 = vpow2.f32 %v1356_v28  ;;  %v531_v17 = vadd.f32 %v530_v46, %v1998_v62  ;;  %v2181_v28 = vld [vmem:[#allocation2 + $0x138] sm:$0xff] }
 0x227   :  { %v1404_v29 = vpop.eup %1403 }
 0x228   :  { %v1406_v31 = vpop.eup %1405  ;;  %v537_v33 = vadd.f32 1.0, %v1404_v29  ;;  %v2188_v29 = vld [vmem:[#allocation2 + $0x120] sm:$0xff] }
 0x229   :  { %v557_v34 = vadd.f32 1.0, %v1406_v31  ;;  %v2195_v31 = vld [vmem:[#allocation2 + $0x108] sm:$0xff] }
 0x22a   :  { %1407 = vrcp.f32 %v537_v33  ;;  %v549_v32 = vand.u32 2147483648, %v537_v33  ;;  %v547_v8 = vand.u32 2147483647, %v537_v33  ;;  %vm543_vm2 = vweird.f32 %v537_v33 }
 0x22b   :  { %1409 = vrcp.f32 %v557_v34  ;;  %v569_v38 = vand.u32 2147483648, %v557_v34  ;;  %vm563_vm6 = vweird.f32 %v557_v34  ;;  %v567_v3 = vand.u32 2147483647, %v557_v34 }
 0x22c   :  { %v550_v43 = vor.u32 1.1754944e-38, %v549_v32  ;;  %vm548_vm4 = vcmp.eq.f32.partialorder %v547_v8, 8.507059e+37  ;;  %v2258_v32 = vld [vmem:[#allocation2 + $0x30] sm:$0xff]  ;;  %v2542_v8 = vld [vmem:[#allocation30_spill] sm:$0xff] }
 0x22d   :  { %v570_v6 = vor.u32 1.1754944e-38, %v569_v38  ;;  %vm568_vm8 = vcmp.eq.f32.partialorder %v567_v3, 8.507059e+37  ;;  %v197_v46 = vadd.f32 %v2542_v8, %v2536_v15 }
 0x230   :  { %v1408_v37 = vpop.eup %1407 }
 0x231   :  { %v1410_v55 = vpop.eup %1409  ;;  %v539_v59 = vmul.f32 %v1408_v37, %v537_v33  ;;  %vm544_vm1 = vweird.f32 %v1408_v37  ;;  %v2202_v33 = vld [vmem:[#allocation2 + $0xf0] sm:$0xff] }
 0x232   :  { %v559_v26 = vmul.f32 %v1410_v55, %v557_v34  ;;  %vm545_vm3 = vmor %vm543_vm2, %vm544_vm1  ;;  %vm564_vm5 = vweird.f32 %v1410_v55  ;;  %v2209_v34 = vld [vmem:[#allocation2 + $0xd8] sm:$0xff] }
 0x233   :  { %v540_v40 = vsub.f32 1.0, %v539_v59  ;;  %vm565_vm7 = vmor %vm563_vm6, %vm564_vm5  ;;  %v2230_v59 = vld [vmem:[#allocation2 + $0x90] sm:$0xff] }
 0x234   :  { %v560_v63 = vsub.f32 1.0, %v559_v26  ;;  %v2237_v26 = vld [vmem:[#allocation2 + $0x78] sm:$0xff] }
 0x235   :  { %v541_v60 = vmul.f32 %v1408_v37, %v540_v40  ;;  %v2244_v40 = vld [vmem:[#allocation2 + $0x60] sm:$0xff] }
 0x236   :  { %v561_v58 = vmul.f32 %v1410_v55, %v560_v63  ;;  %v2251_v63 = vld [vmem:[#allocation2 + $0x48] sm:$0xff] }
 0x237   :  { %v542_v41 = vadd.f32 %v1408_v37, %v541_v60  ;;  %v2265_v60 = vld [vmem:[#allocation2 + $0x18] sm:$0xff] }
 0x238   :  { %v562_v35 = vadd.f32 %v1410_v55, %v561_v58 }
 0x239   :  { %v546_v1 = vsel %vm545_vm3, %v1408_v37, %v542_v41  ;;  %v2216_v37 = vld [vmem:[#allocation2 + $0xc0] sm:$0xff] }
 0x23a   :  { %v551_v36 = vsel %vm548_vm4, %v550_v43, %v546_v1  ;;  %v566_v4 = vsel %vm565_vm7, %v1410_v55, %v562_v35  ;;  %v2223_v55 = vld [vmem:[#allocation2 + $0xa8] sm:$0xff]  ;;  %v2543_v1 = vld [vmem:[#allocation20_spill] sm:$0xff] }
 0x23b   :  { %v573_v57 = vmul.f32 %v551_v36, %v531_v17  ;;  %v571_v7 = vsel %vm568_vm8, %v570_v6, %v566_v4 }
 0x23c   :  { %v576_v10 = vsub.f32 1.0, %v571_v7  ;;  %v578_v14 = vmul.f32 %v571_v7, %v2088_v30  ;;  %v2164_v30 = vld [vmem:[#allocation2 + $0x178] sm:$0xff] }
 0x23d   :  { %v574_v2 = vadd.f32 %v573_v57, %v235_v56 }
 0x23f   :  { %1411 = vtanh.f32 %v574_v2 }
 0x245   :  { %v1412_v11 = vpop.eup %1411 }
 0x246   :  { %v577_v13 = vmul.f32 %v1412_v11, %v576_v10 }
 0x248   :  { %v2150_v16 = vadd.f32 %v578_v14, %v577_v13 }
 0x24a   :  { %596 = vmatmul.f32.vlgmr.msrb.gmra.mxu3 %v2150_v16  ;;  %616 = vmatmul.f32.vlgmr.msrb.gmra.mxu0 %v2150_v16 }
 0x24b   :  { %636 = vmatmul.f32.vlgmr.msrb.gmra.mxu1 %v2150_v16  ;;  %834 = vmatpush.msrb.mxu3 %v2155_v18 }
 0x24c   :  { %901 = vmatpush.msrb.mxu0 %v2158_v20  ;;  %921 = vmatpush.msrb.mxu1 %v2161_v22 }
 0x24d   :  { %835 = vmatpush.msrb.mxu3 %v2164_v30 }
 0x24e   :  { %902 = vmatpush.msrb.mxu0 %v2167_v23  ;;  %922 = vmatpush.msrb.mxu1 %v1737_v39  ;;  %v2185_v39 = vld [vmem:[#allocation2 + $0x130] sm:$0xff] }
 0x24f   :  { %836 = vmatpush.msrb.mxu3 %v2171_v24 }
 0x250   :  { %903 = vmatpush.msrb.mxu0 %v2174_v25  ;;  %923 = vmatpush.msrb.mxu1 %v1745_v42  ;;  %v2192_v42 = vld [vmem:[#allocation2 + $0x118] sm:$0xff] }
 0x251   :  { %837 = vmatpush.msrb.mxu3 %v2178_v27 }
 0x252   :  { %904 = vmatpush.msrb.mxu0 %v2181_v28  ;;  %924 = vmatpush.msrb.mxu1 %v1753_v44  ;;  %v2199_v44 = vld [vmem:[#allocation2 + $0x100] sm:$0xff] }
 0x253   :  { %838 = vmatpush.msrb.mxu3 %v2185_v39 }
 0x254   :  { %905 = vmatpush.msrb.mxu0 %v2188_v29  ;;  %925 = vmatpush.msrb.mxu1 %v1758_v45  ;;  %v2206_v45 = vld [vmem:[#allocation2 + $0xe8] sm:$0xff] }
 0x255   :  { %839 = vmatpush.msrb.mxu3 %v2192_v42 }
 0x256   :  { %906 = vmatpush.msrb.mxu0 %v2195_v31  ;;  %926 = vmatpush.msrb.mxu1 %v1770_v47  ;;  %v2213_v47 = vld [vmem:[#allocation2 + $0xd0] sm:$0xff] }
 0x257   :  { %840 = vmatpush.msrb.mxu3 %v2199_v44 }
 0x258   :  { %907 = vmatpush.msrb.mxu0 %v2202_v33  ;;  %927 = vmatpush.msrb.mxu1 %v1778_v48  ;;  %v2220_v48 = vld [vmem:[#allocation2 + $0xb8] sm:$0xff] }
 0x259   :  { %841 = vmatpush.msrb.mxu3 %v2206_v45 }
 0x25a   :  { %908 = vmatpush.msrb.mxu0 %v2209_v34  ;;  %928 = vmatpush.msrb.mxu1 %v1784_v49  ;;  %v2227_v49 = vld [vmem:[#allocation2 + $0xa0] sm:$0xff] }
 0x25b   :  { %842 = vmatpush.msrb.mxu3 %v2213_v47 }
 0x25c   :  { %909 = vmatpush.msrb.mxu0 %v2216_v37  ;;  %929 = vmatpush.msrb.mxu1 %v1790_v50  ;;  %v2234_v50 = vld [vmem:[#allocation2 + $0x88] sm:$0xff] }
 0x25d   :  { %843 = vmatpush.msrb.mxu3 %v2220_v48 }
 0x25e   :  { %910 = vmatpush.msrb.mxu0 %v2223_v55  ;;  %930 = vmatpush.msrb.mxu1 %v1802_v52  ;;  %v2241_v52 = vld [vmem:[#allocation2 + $0x70] sm:$0xff] }
 0x25f   :  { %844 = vmatpush.msrb.mxu3 %v2227_v49 }
 0x260   :  { %911 = vmatpush.msrb.mxu0 %v2230_v59  ;;  %931 = vmatpush.msrb.mxu1 %v1810_v53  ;;  %v2248_v53 = vld [vmem:[#allocation2 + $0x58] sm:$0xff] }
 0x261   :  { %845 = vmatpush.msrb.mxu3 %v2234_v50 }
 0x262   :  { %912 = vmatpush.msrb.mxu0 %v2237_v26  ;;  %932 = vmatpush.msrb.mxu1 %v1816_v54  ;;  %v2255_v54 = vld [vmem:[#allocation2 + $0x40] sm:$0xff] }
 0x263   :  { %846 = vmatpush.msrb.mxu3 %v2241_v52 }
 0x264   :  { %913 = vmatpush.msrb.mxu0 %v2244_v40  ;;  %933 = vmatpush.msrb.mxu1 %v2526_v0  ;;  %v2262_v0 = vld [vmem:[#allocation2 + $0x28] sm:$0xff] }
 0x265   :  { %847 = vmatpush.msrb.mxu3 %v2248_v53 }
 0x266   :  { %914 = vmatpush.msrb.mxu0 %v2251_v63  ;;  %934 = vmatpush.msrb.mxu1 %v2529_v5 }
 0x267   :  { %848 = vmatpush.msrb.mxu3 %v2255_v54 }
 0x268   :  { %915 = vmatpush.msrb.mxu0 %v2258_v32  ;;  %935 = vmatpush.msrb.mxu1 %v2532_v9 }
 0x269   :  { %849 = vmatpush.msrb.mxu3 %v2262_v0 }
 0x26a   :  { %916 = vmatpush.msrb.mxu0 %v2265_v60  ;;  %936 = vmatpush.msrb.mxu1 %v2535_v12 }
 0x2c7   :  { %v617_v5 = vpop.f32.mrf.mxu0 }
 0x2c8   :  { %v618_v58 = vadd.f32 %v617_v5, %v2539_v21  ;;  %v637_v14 = vpop.f32.mrf.mxu1 }
 0x2ca   :  { %v660_v41 = vadd.f32 %v618_v58, %v197_v46  ;;  %v638_v58 = vadd.f32 %v637_v14, %v1998_v62 }
 0x2cc   :  { %v1358_v43 = vmul.f32 -1.442695, %v660_v41 }
 0x2cd   :  { %v597_v17 = vpop.f32.mrf.mxu3 }
 0x2ce   :  { %1413 = vpow2.f32 %v1358_v43  ;;  %v598_v9 = vadd.f32 %v597_v17, %v2538_v19 }
 0x2d0   :  { %v640_v36 = vadd.f32 %v598_v9, %v2543_v1  ;;  %v2544_v9 = vld [vmem:[#allocation31_spill] sm:$0xff] }
 0x2d1   :  { %v238_v1 = vadd.f32 %v2544_v9, %v2001_v51 }
 0x2d2   :  { %v1357_v35 = vmul.f32 -1.442695, %v640_v36 }
 0x2d4   :  { %v1414_v61 = vpop.eup %1413  ;;  %1415 = vpow2.f32 %v1357_v35 }
 0x2d5   :  { %v664_v56 = vadd.f32 1.0, %v1414_v61 }
 0x2d7   :  { %1417 = vrcp.f32 %v664_v56  ;;  %v676_v36 = vand.u32 2147483648, %v664_v56  ;;  %vm670_vm14 = vweird.f32 %v664_v56  ;;  %v674_v61 = vand.u32 2147483647, %v664_v56 }
 0x2d9   :  { %vm675_vm0 = vcmp.eq.f32.partialorder %v674_v61, 8.507059e+37 }
 0x2da   :  { %v1416_v12 = vpop.eup %1415 }
 0x2db   :  { %v644_v57 = vadd.f32 1.0, %v1416_v12 }
 0x2dd   :  { %1419 = vrcp.f32 %v644_v57  ;;  %v1418_v38 = vpop.eup %1417  ;;  %v656_v10 = vand.u32 2147483648, %v644_v57  ;;  %v654_v13 = vand.u32 2147483647, %v644_v57  ;;  %vm650_vm10 = vweird.f32 %v644_v57 }
 0x2de   :  { %v666_v3 = vmul.f32 %v1418_v38, %v664_v56  ;;  %vm671_vm13 = vweird.f32 %v1418_v38  ;;  %v1506_v56 = vld [vmem:[#allocation2 + $0x170] sm:$0xff] }
 0x2df   :  { %v657_v46 = vor.u32 1.1754944e-38, %v656_v10  ;;  %vm655_vm12 = vcmp.eq.f32.partialorder %v654_v13, 8.507059e+37  ;;  %vm672_vm15 = vmor %vm670_vm14, %vm671_vm13  ;;  %v2545_v13 = vld [vmem:[#allocation32_spill] sm:$0xff] }
 0x2e0   :  { %v667_v6 = vsub.f32 1.0, %v666_v3  ;;  %v200_v14 = vadd.f32 %v2545_v13, %v2536_v15 }
 0x2e2   :  { %v668_v5 = vmul.f32 %v1418_v38, %v667_v6 }
 0x2e3   :  { %v1420_v2 = vpop.eup %1419 }
 0x2e4   :  { %v646_v4 = vmul.f32 %v1420_v2, %v644_v57  ;;  %vm651_vm9 = vweird.f32 %v1420_v2  ;;  %v669_v17 = vadd.f32 %v1418_v38, %v668_v5  ;;  %v677_v57 = vor.u32 1.1754944e-38, %v676_v36 }
 0x2e5   :  { %vm652_vm11 = vmor %vm650_vm10, %vm651_vm9 }
 0x2e6   :  { %v647_v7 = vsub.f32 1.0, %v646_v4  ;;  %v673_v3 = vsel %vm672_vm15, %v1418_v38, %v669_v17  ;;  %v1508_v38 = vld [vmem:[#allocation2 + $0x140] sm:$0xff] }
 0x2e7   :  { %v678_v4 = vsel %vm675_vm0, %v677_v57, %v673_v3 }
 0x2e8   :  { %v648_v11 = vmul.f32 %v1420_v2, %v647_v7  ;;  %v683_v6 = vsub.f32 1.0, %v678_v4  ;;  %v685_v10 = vmul.f32 %v678_v4, %v2150_v16  ;;  %v1507_v16 = vld [vmem:[#allocation2 + $0x158] sm:$0xff] }
 0x2ea   :  { %v649_v8 = vadd.f32 %v1420_v2, %v648_v11 }
 0x2ec   :  { %v653_v41 = vsel %vm652_vm11, %v1420_v2, %v649_v8  ;;  %v2546_v8 = vld [vmem:[#allocation21_spill] sm:$0xff] }
 0x2ed   :  { %v658_v43 = vsel %vm655_vm12, %v657_v46, %v653_v41 }
 0x2ee   :  { %v680_v35 = vmul.f32 %v658_v43, %v638_v58 }
 0x2f0   :  { %v681_v12 = vadd.f32 %v680_v35, %v238_v1 }
 0x2f2   :  { %1421 = vtanh.f32 %v681_v12 }
 0x2f8   :  { %v1422_v2 = vpop.eup %1421 }
 0x2f9   :  { %v684_v7 = vmul.f32 %v1422_v2, %v683_v6 }
 0x2fb   :  { %v2278_v11 = vadd.f32 %v685_v10, %v684_v7 }
 0x2fd   :  { %703 = vmatmul.f32.vlgmr.msrb.gmra.mxu2 %v2278_v11  ;;  %723 = vmatmul.f32.vlgmr.msra.gmra.mxu3 %v2278_v11 }
 0x2fe   :  { %743 = vmatmul.f32.vlgmr.msra.gmra.mxu0 %v2278_v11  ;;  %941 = vmatpush.msrb.mxu2 %v2155_v18 }
 0x2ff   :  { %1008 = vmatpush.msra.mxu3 %v2158_v20  ;;  %1028 = vmatpush.msra.mxu0 %v2161_v22  ;;  %v1509_v20 = vld [vmem:[#allocation2 + $0x128] sm:$0xff]  ;;  %v1510_v22 = vld [vmem:[#allocation2 + $0x110] sm:$0xff] }
 0x300   :  { %942 = vmatpush.msrb.mxu2 %v2164_v30 }
 0x301   :  { %1009 = vmatpush.msra.mxu3 %v2167_v23  ;;  %1029 = vmatpush.msra.mxu0 %v1506_v56  ;;  %v1511_v23 = vld [vmem:[#allocation2 + $0xf8] sm:$0xff] }
 0x302   :  { %943 = vmatpush.msrb.mxu2 %v2171_v24 }
 0x303   :  { %1010 = vmatpush.msra.mxu3 %v2174_v25  ;;  %1030 = vmatpush.msra.mxu0 %v1507_v16  ;;  %v1512_v25 = vld [vmem:[#allocation2 + $0xe0] sm:$0xff] }
 0x304   :  { %944 = vmatpush.msrb.mxu2 %v2178_v27 }
 0x305   :  { %1011 = vmatpush.msra.mxu3 %v2181_v28  ;;  %1031 = vmatpush.msra.mxu0 %v1508_v38  ;;  %v1513_v28 = vld [vmem:[#allocation2 + $0xc8] sm:$0xff] }
 0x306   :  { %945 = vmatpush.msrb.mxu2 %v2185_v39 }
 0x307   :  { %1012 = vmatpush.msra.mxu3 %v2188_v29  ;;  %1032 = vmatpush.msra.mxu0 %v1509_v20  ;;  %v1514_v29 = vld [vmem:[#allocation2 + $0xb0] sm:$0xff] }
 0x308   :  { %946 = vmatpush.msrb.mxu2 %v2192_v42 }
 0x309   :  { %1013 = vmatpush.msra.mxu3 %v2195_v31  ;;  %1033 = vmatpush.msra.mxu0 %v1510_v22  ;;  %v1515_v31 = vld [vmem:[#allocation2 + $0x98] sm:$0xff] }
 0x30a   :  { %947 = vmatpush.msrb.mxu2 %v2199_v44 }
 0x30b   :  { %1014 = vmatpush.msra.mxu3 %v2202_v33  ;;  %1034 = vmatpush.msra.mxu0 %v1511_v23  ;;  %v1516_v33 = vld [vmem:[#allocation2 + $0x80] sm:$0xff] }
 0x30c   :  { %948 = vmatpush.msrb.mxu2 %v2206_v45  ;;  %v2547_v23 = vld [vmem:[#allocation33_spill] sm:$0xff] }
 0x30d   :  { %1015 = vmatpush.msra.mxu3 %v2209_v34  ;;  %1035 = vmatpush.msra.mxu0 %v1512_v25  ;;  %v1517_v34 = vld [vmem:[#allocation2 + $0x68] sm:$0xff]  ;;  %v241_v25 = vadd.f32 %v2547_v23, %v2001_v51 }
 0x30e   :  { %949 = vmatpush.msrb.mxu2 %v2213_v47 }
 0x30f   :  { %1016 = vmatpush.msra.mxu3 %v2216_v37  ;;  %1036 = vmatpush.msra.mxu0 %v1513_v28  ;;  %v1518_v37 = vld [vmem:[#allocation2 + $0x50] sm:$0xff] }
 0x310   :  { %950 = vmatpush.msrb.mxu2 %v2220_v48 }
 0x311   :  { %1017 = vmatpush.msra.mxu3 %v2223_v55  ;;  %1037 = vmatpush.msra.mxu0 %v1514_v29  ;;  %v1519_v55 = vld [vmem:[#allocation2 + $0x38] sm:$0xff] }
 0x312   :  { %951 = vmatpush.msrb.mxu2 %v2227_v49 }
 0x313   :  { %1018 = vmatpush.msra.mxu3 %v2230_v59  ;;  %1038 = vmatpush.msra.mxu0 %v1515_v31  ;;  %v1520_v59 = vld [vmem:[#allocation2 + $0x20] sm:$0xff] }
 0x314   :  { %952 = vmatpush.msrb.mxu2 %v2234_v50 }
 0x315   :  { %1019 = vmatpush.msra.mxu3 %v2237_v26  ;;  %1039 = vmatpush.msra.mxu0 %v1516_v33 }
 0x316   :  { %953 = vmatpush.msrb.mxu2 %v2241_v52 }
 0x317   :  { %1020 = vmatpush.msra.mxu3 %v2244_v40  ;;  %1040 = vmatpush.msra.mxu0 %v1517_v34 }
 0x318   :  { %954 = vmatpush.msrb.mxu2 %v2248_v53 }
 0x319   :  { %1021 = vmatpush.msra.mxu3 %v2251_v63  ;;  %1041 = vmatpush.msra.mxu0 %v1518_v37 }
 0x31a   :  { %955 = vmatpush.msrb.mxu2 %v2255_v54 }
 0x31b   :  { %1022 = vmatpush.msra.mxu3 %v2258_v32  ;;  %1042 = vmatpush.msra.mxu0 %v1519_v55 }
 0x31c   :  { %956 = vmatpush.msrb.mxu2 %v2262_v0 }
 0x31d   :  { %1023 = vmatpush.msra.mxu3 %v2265_v60  ;;  %1043 = vmatpush.msra.mxu0 %v1520_v59 }
 0x37b   :  { %v744_v2 = vpop.f32.mrf.mxu0 }
 0x37c   :  { %v745_v16 = vadd.f32 %v744_v2, %v1998_v62 }
 0x380   :  { %v704_v26 = vpop.f32.mrf.mxu2  ;;  %v724_v40 = vpop.f32.mrf.mxu3 }
 0x381   :  { %v705_v63 = vadd.f32 %v704_v26, %v2538_v19  ;;  %v725_v5 = vadd.f32 %v724_v40, %v2539_v21 }
 0x383   :  { %v747_v46 = vadd.f32 %v705_v63, %v2546_v8  ;;  %v767_v32 = vadd.f32 %v725_v5, %v200_v14 }
 0x385   :  { %v1359_v58 = vmul.f32 -1.442695, %v747_v46  ;;  %v1360_v41 = vmul.f32 -1.442695, %v767_v32 }
 0x387   :  { %1423 = vpow2.f32 %v1359_v58 }
 0x388   :  { %1425 = vpow2.f32 %v1360_v41 }
 0x38d   :  { %v1424_v43 = vpop.eup %1423 }
 0x38e   :  { %v1426_v60 = vpop.eup %1425  ;;  %v751_v17 = vadd.f32 1.0, %v1424_v43 }
 0x38f   :  { %v771_v9 = vadd.f32 1.0, %v1426_v60 }
 0x390   :  { %1427 = vrcp.f32 %v751_v17  ;;  %v763_v3 = vand.u32 2147483648, %v751_v17  ;;  %v761_v6 = vand.u32 2147483647, %v751_v17  ;;  %vm757_vm2 = vweird.f32 %v751_v17 }
 0x391   :  { %1429 = vrcp.f32 %v771_v9  ;;  %v783_v28 = vand.u32 2147483648, %v771_v9  ;;  %vm777_vm6 = vweird.f32 %v771_v9  ;;  %v781_v31 = vand.u32 2147483647, %v771_v9 }
 0x392   :  { %v764_v56 = vor.u32 1.1754944e-38, %v763_v3  ;;  %vm762_vm4 = vcmp.eq.f32.partialorder %v761_v6, 8.507059e+37 }
 0x393   :  { %v784_v37 = vor.u32 1.1754944e-38, %v783_v28  ;;  %vm782_vm8 = vcmp.eq.f32.partialorder %v781_v31, 8.507059e+37 }
 0x396   :  { %v1428_v1 = vpop.eup %1427 }
 0x397   :  { %v1430_v36 = vpop.eup %1429  ;;  %v753_v35 = vmul.f32 %v1428_v1, %v751_v17  ;;  %vm758_vm1 = vweird.f32 %v1428_v1 }
 0x398   :  { %v773_v61 = vmul.f32 %v1430_v36, %v771_v9  ;;  %vm759_vm3 = vmor %vm757_vm2, %vm758_vm1  ;;  %vm778_vm5 = vweird.f32 %v1430_v36 }
 0x399   :  { %v754_v12 = vsub.f32 1.0, %v753_v35  ;;  %vm779_vm7 = vmor %vm777_vm6, %vm778_vm5 }
 0x39a   :  { %v774_v57 = vsub.f32 1.0, %v773_v61 }
 0x39b   :  { %v755_v4 = vmul.f32 %v1428_v1, %v754_v12 }
 0x39c   :  { %v775_v7 = vmul.f32 %v1430_v36, %v774_v57 }
 0x39d   :  { %v756_v10 = vadd.f32 %v1428_v1, %v755_v4 }
 0x39e   :  { %v776_v22 = vadd.f32 %v1430_v36, %v775_v7 }
 0x39f   :  { %v760_v38 = vsel %vm759_vm3, %v1428_v1, %v756_v10 }
 0x3a0   :  { %v765_v20 = vsel %vm762_vm4, %v764_v56, %v760_v38  ;;  %v780_v34 = vsel %vm779_vm7, %v1430_v36, %v776_v22  ;;  %v2550_v36 = vld [vmem:[#allocation35_spill] sm:$0xff] }
 0x3a1   :  { %v787_v29 = vmul.f32 %v765_v20, %v745_v16  ;;  %v785_v55 = vsel %vm782_vm8, %v784_v37, %v780_v34  ;;  %v244_v35 = vadd.f32 %v2550_v36, %v2001_v51  ;;  %v2552_v37 = vld [vmem:[#allocation24_spill] sm:$0xff] }
 0x3a2   :  { %v790_v59 = vsub.f32 1.0, %v785_v55  ;;  %v792_v13 = vmul.f32 %v785_v55, %v2278_v11 }
 0x3a3   :  { %v788_v33 = vadd.f32 %v787_v29, %v241_v25  ;;  %v2551_v29 = vld [vmem:[#allocation36_spill] sm:$0xff] }
 0x3a4   :  { %v206_v31 = vadd.f32 %v2551_v29, %v2536_v15  ;;  %v1121_v29 = vld [vmem:[%s2456_s2 + $0x30] sm:$0xff] }
 0x3a5   :  { %1431 = vtanh.f32 %v788_v33 }
 0x3ab   :  { %v1432_v26 = vpop.eup %1431 }
 0x3ac   :  { %v791_v40 = vmul.f32 %v1432_v26, %v790_v59 }
 0x3ae   :  { %v2325_v14 = vadd.f32 %v792_v13, %v791_v40 }
 0x3b0   :  { %810 = vmatmul.f32.vlgmr.msra.gmra.mxu1 %v2325_v14  ;;  %830 = vmatmul.f32.vlgmr.msra.gmra.mxu2 %v2325_v14 }
 0x3b1   :  { %850 = vmatmul.f32.vlgmr.msrb.gmra.mxu3 %v2325_v14  ;;  %1048 = vmatpush.msra.mxu1 %v2155_v18 }
 0x3b3   :  { %1049 = vmatpush.msra.mxu1 %v2164_v30 }
 0x3b5   :  { %1050 = vmatpush.msra.mxu1 %v2171_v24  ;;  %v2548_v24 = vld [vmem:[#allocation23_spill] sm:$0xff] }
 0x3b7   :  { %1051 = vmatpush.msra.mxu1 %v2178_v27 }
 0x3b9   :  { %1052 = vmatpush.msra.mxu1 %v2185_v39 }
 0x3bb   :  { %1053 = vmatpush.msra.mxu1 %v2192_v42 }
 0x3bd   :  { %1054 = vmatpush.msra.mxu1 %v2199_v44  ;;  %v2549_v44 = vld [vmem:[#allocation34_spill] sm:$0xff] }
 0x3bf   :  { %1055 = vmatpush.msra.mxu1 %v2206_v45  ;;  %v203_v45 = vadd.f32 %v2549_v44, %v2536_v15 }
 0x3c1   :  { %1056 = vmatpush.msra.mxu1 %v2213_v47 }
 0x3c3   :  { %1057 = vmatpush.msra.mxu1 %v2220_v48 }
 0x3c5   :  { %1058 = vmatpush.msra.mxu1 %v2227_v49 }
 0x3c7   :  { %1059 = vmatpush.msra.mxu1 %v2234_v50 }
 0x3c9   :  { %1060 = vmatpush.msra.mxu1 %v2241_v52 }
 0x3cb   :  { %1061 = vmatpush.msra.mxu1 %v2248_v53 }
 0x3cd   :  { %1062 = vmatpush.msra.mxu1 %v2255_v54 }
 0x3cf   :  { %1063 = vmatpush.msra.mxu1 %v2262_v0 }
 0x42d   :  { %v811_v18 = vpop.f32.mrf.mxu1 }
 0x42e   :  { %v812_v30 = vadd.f32 %v811_v18, %v2538_v19 }
 0x430   :  { %v854_v27 = vadd.f32 %v812_v30, %v2548_v24 }
 0x432   :  { %v1361_v39 = vmul.f32 -1.442695, %v854_v27 }
 0x433   :  { %v831_v42 = vpop.f32.mrf.mxu2 }
 0x434   :  { %1433 = vpow2.f32 %v1361_v39  ;;  %v832_v47 = vadd.f32 %v831_v42, %v2539_v21  ;;  %v851_v58 = vpop.f32.mrf.mxu3 }
 0x435   :  { %v852_v9 = vadd.f32 %v851_v58, %v1998_v62 }
 0x436   :  { %v874_v48 = vadd.f32 %v832_v47, %v203_v45 }
 0x438   :  { %v1362_v49 = vmul.f32 -1.442695, %v874_v48 }
 0x43a   :  { %v1434_v50 = vpop.eup %1433  ;;  %1435 = vpow2.f32 %v1362_v49 }
 0x43b   :  { %v858_v52 = vadd.f32 1.0, %v1434_v50 }
 0x43d   :  { %1437 = vrcp.f32 %v858_v52  ;;  %v870_v5 = vand.u32 2147483648, %v858_v52  ;;  %v868_v46 = vand.u32 2147483647, %v858_v52  ;;  %vm864_vm10 = vweird.f32 %v858_v52 }
 0x43f   :  { %v871_v60 = vor.u32 1.1754944e-38, %v870_v5  ;;  %vm869_vm12 = vcmp.eq.f32.partialorder %v868_v46, 8.507059e+37 }
 0x440   :  { %v1436_v53 = vpop.eup %1435 }
 0x441   :  { %v878_v54 = vadd.f32 1.0, %v1436_v53 }
 0x443   :  { %v1438_v0 = vpop.eup %1437  ;;  %1439 = vrcp.f32 %v878_v54  ;;  %v890_v57 = vand.u32 2147483648, %v878_v54  ;;  %v888_v4 = vand.u32 2147483647, %v878_v54  ;;  %vm884_vm14 = vweird.f32 %v878_v54 }
 0x444   :  { %v860_v11 = vmul.f32 %v1438_v0, %v858_v52  ;;  %vm865_vm9 = vweird.f32 %v1438_v0 }
 0x445   :  { %vm866_vm11 = vmor %vm864_vm10, %vm865_vm9  ;;  %v891_v10 = vor.u32 1.1754944e-38, %v890_v57  ;;  %vm889_vm0 = vcmp.eq.f32.partialorder %v888_v4, 8.507059e+37  ;;  %v1129_v57 = vld [vmem:[%s2456_s2 + $0x70] sm:$0xff]  ;;  %v1128_v4 = vld [vmem:[%s2456_s2 + $0x68] sm:$0xff] }
 0x446   :  { %v861_v63 = vsub.f32 1.0, %v860_v11 }
 0x448   :  { %v862_v8 = vmul.f32 %v1438_v0, %v861_v63 }
 0x449   :  { %v1440_v32 = vpop.eup %1439 }
 0x44a   :  { %v880_v41 = vmul.f32 %v1440_v32, %v878_v54  ;;  %v863_v43 = vadd.f32 %v1438_v0, %v862_v8  ;;  %vm885_vm13 = vweird.f32 %v1440_v32  ;;  %v2553_v8 = vld [vmem:[#allocation37_spill] sm:$0xff] }
 0x44b   :  { %vm886_vm15 = vmor %vm884_vm14, %vm885_vm13  ;;  %v247_v46 = vadd.f32 %v2553_v8, %v2001_v51 }
 0x44c   :  { %v881_v17 = vsub.f32 1.0, %v880_v41  ;;  %v867_v1 = vsel %vm866_vm11, %v1438_v0, %v863_v43 }
 0x44d   :  { %v872_v61 = vsel %vm869_vm12, %v871_v60, %v867_v1 }
 0x44e   :  { %v894_v12 = vmul.f32 %v872_v61, %v852_v9  ;;  %v882_v3 = vmul.f32 %v1440_v32, %v881_v17 }
 0x450   :  { %v895_v6 = vadd.f32 %v894_v12, %v244_v35  ;;  %v883_v2 = vadd.f32 %v1440_v32, %v882_v3  ;;  %v1130_v3 = vld [vmem:[%s2456_s2 + $0x78] sm:$0xff] }
 0x451   :  { %1139 = vmatpush.msra.mxu2 %v1130_v3 }
 0x452   :  { %1441 = vtanh.f32 %v895_v6  ;;  %v887_v7 = vsel %vm886_vm15, %v1440_v32, %v883_v2  ;;  %v1127_v6 = vld [vmem:[%s2456_s2 + $0x60] sm:$0xff]  ;;  %v1126_v2 = vld [vmem:[%s2456_s2 + $0x58] sm:$0xff] }
 0x453   :  { %v892_v56 = vsel %vm889_vm0, %v891_v10, %v887_v7  ;;  %1140 = vmatpush.msra.mxu2 %v1129_v57  ;;  %v2554_v10 = vld [vmem:[#allocation38_spill] sm:$0xff] }
 0x454   :  { %v897_v16 = vsub.f32 1.0, %v892_v56  ;;  %v899_v22 = vmul.f32 %v892_v56, %v2325_v14  ;;  %v209_v56 = vadd.f32 %v2554_v10, %v2536_v15  ;;  %v1122_v15 = vld [vmem:[%s2456_s2 + $0x38] sm:$0xff]  ;;  %v1134_v57 = vld [vmem:[%s2457_s3 + $0x8] sm:$0xff] }
 0x455   :  { %1141 = vmatpush.msra.mxu2 %v1128_v4  ;;  %v1133_v4 = vld [vmem:[%s2457_s3] sm:$0xff] }
 0x457   :  { %1142 = vmatpush.msra.mxu2 %v1127_v6  ;;  %v1381_v6 = vld [vmem:[%s2456_s2 + $0x83] ss:$0 sm:$0xff] }
 0x458   :  { %v1442_v38 = vpop.eup %1441 }
 0x459   :  { %v898_v20 = vmul.f32 %v1442_v38, %v897_v16  ;;  %1143 = vmatpush.msra.mxu2 %v1126_v2  ;;  %v1125_v38 = vld [vmem:[%s2456_s2 + $0x50] sm:$0xff] }
 0x45b   :  { %v900_v23 = vadd.f32 %v899_v22, %v898_v20  ;;  %1144 = vmatpush.msra.mxu2 %v1125_v38  ;;  %v1124_v22 = vld [vmem:[%s2456_s2 + $0x48] sm:$0xff] }
 0x45d   :  { %917 = vmatmul.f32.vlgmr.msrb.gmra.mxu0 %v900_v23  ;;  %937 = vmatmul.f32.vlgmr.msrb.gmra.mxu1 %v900_v23 }
 0x45e   :  { %957 = vmatmul.f32.vlgmr.msrb.gmra.mxu2 %v900_v23 }
 0x45f   :  { %1145 = vmatpush.msra.mxu2 %v1124_v22 }
 0x4da   :  { %v918_v25 = vpop.f32.mrf.mxu0  ;;  %v938_v28 = vpop.f32.mrf.mxu1 }
 0x4db   :  { %v919_v33 = vadd.f32 %v918_v25, %v2538_v19  ;;  %v939_v34 = vadd.f32 %v938_v28, %v2539_v21  ;;  %v1123_v25 = vld [vmem:[%s2456_s2 + $0x40] sm:$0xff] }
 0x4dc   :  { %1146 = vmatpush.msra.mxu2 %v1123_v25 }
 0x4dd   :  { %v961_v55 = vadd.f32 %v919_v33, %v2552_v37  ;;  %v981_v59 = vadd.f32 %v939_v34, %v206_v31  ;;  %v2555_v31 = vld [vmem:[#allocation25_spill] sm:$0xff]  ;;  %v1120_v34 = vld [vmem:[%s2456_s2 + $0x28] sm:$0xff] }
 0x4de   :  { %1147 = vmatpush.msra.mxu2 %v1122_v15 }
 0x4df   :  { %v1363_v26 = vmul.f32 -1.442695, %v961_v55  ;;  %v1364_v40 = vmul.f32 -1.442695, %v981_v59  ;;  %v1119_v55 = vld [vmem:[%s2456_s2 + $0x20] sm:$0xff] }
 0x4e0   :  { %1148 = vmatpush.msra.mxu2 %v1121_v29 }
 0x4e1   :  { %1443 = vpow2.f32 %v1363_v26  ;;  %v958_v50 = vpop.f32.mrf.mxu2 }
 0x4e2   :  { %1445 = vpow2.f32 %v1364_v40  ;;  %v959_v0 = vadd.f32 %v958_v50, %v1998_v62  ;;  %1149 = vmatpush.msra.mxu2 %v1120_v34  ;;  %v1117_v40 = vld [vmem:[%s2456_s2 + $0x10] sm:$0xff] }
 0x4e4   :  { %1150 = vmatpush.msra.mxu2 %v1119_v55 }
 0x4e7   :  { %v1444_v13 = vpop.eup %1443 }
 0x4e8   :  { %v1446_v14 = vpop.eup %1445  ;;  %v965_v18 = vadd.f32 1.0, %v1444_v13  ;;  %v1116_v13 = vld [vmem:[%s2456_s2 + $0x8] sm:$0xff] }
 0x4e9   :  { %v985_v30 = vadd.f32 1.0, %v1446_v14 }
 0x4ea   :  { %1447 = vrcp.f32 %v965_v18  ;;  %v977_v47 = vand.u32 2147483648, %v965_v18  ;;  %v975_v49 = vand.u32 2147483647, %v965_v18  ;;  %vm971_vm2 = vweird.f32 %v965_v18 }
 0x4eb   :  { %1449 = vrcp.f32 %v985_v30  ;;  %v997_v58 = vand.u32 2147483648, %v985_v30  ;;  %vm991_vm6 = vweird.f32 %v985_v30  ;;  %v995_v41 = vand.u32 2147483647, %v985_v30 }
 0x4ec   :  { %v978_v54 = vor.u32 1.1754944e-38, %v977_v47  ;;  %vm976_vm4 = vcmp.eq.f32.partialorder %v975_v49, 8.507059e+37 }
 0x4ed   :  { %v998_v17 = vor.u32 1.1754944e-38, %v997_v58  ;;  %vm996_vm8 = vcmp.eq.f32.partialorder %v995_v41, 8.507059e+37 }
 0x4f0   :  { %v1448_v24 = vpop.eup %1447 }
 0x4f1   :  { %v1450_v27 = vpop.eup %1449  ;;  %v967_v39 = vmul.f32 %v1448_v24, %v965_v18  ;;  %vm972_vm1 = vweird.f32 %v1448_v24  ;;  %v1115_v18 = vld [vmem:[%s2456_s2] sm:$0xff] }
 0x4f2   :  { %v987_v42 = vmul.f32 %v1450_v27, %v985_v30  ;;  %vm973_vm3 = vmor %vm971_vm2, %vm972_vm1  ;;  %vm992_vm5 = vweird.f32 %v1450_v27  ;;  %vm1163_vm1 = vcmask 261120   ;;  %vm1259_vm2 = vcmask 7168  }
 0x4f3   :  { %v968_v44 = vsub.f32 1.0, %v967_v39  ;;  %vm993_vm7 = vmor %vm991_vm6, %vm992_vm5  ;;  %vm1298_vm5 = vcmask 39936   ;;  %vm1300_vm6 = vcmask 56320  }
 0x4f4   :  { %v988_v45 = vsub.f32 1.0, %v987_v42 }
 0x4f5   :  { %v969_v48 = vmul.f32 %v1448_v24, %v968_v44 }
 0x4f6   :  { %v989_v52 = vmul.f32 %v1450_v27, %v988_v45 }
 0x4f7   :  { %v970_v53 = vadd.f32 %v1448_v24, %v969_v48 }
 0x4f8   :  { %v990_v5 = vadd.f32 %v1450_v27, %v989_v52 }
 0x4f9   :  { %v974_v11 = vsel %vm973_vm3, %v1448_v24, %v970_v53  ;;  %v1136_v24 = vld [vmem:[%s2457_s3 + $0x18] sm:$0xff]  ;;  %vm1261_vm3 = vcmask 15360  }
 0x4fa   :  { %v979_v63 = vsel %vm976_vm4, %v978_v54, %v974_v11  ;;  %v994_v60 = vsel %vm993_vm7, %v1450_v27, %v990_v5  ;;  %1209 = vmatpush.msrb.mxu0 %v1136_v24  ;;  %1179 = vmatpush.msrb.mxu3 %v1136_v24  ;;  %vm1263_vm4 = vcmask 23552   ;;  %vm1302_vm7 = vcmask 72704  }
 0x4fb   :  { %v1001_v32 = vmul.f32 %v979_v63, %v959_v0  ;;  %v999_v9 = vsel %vm996_vm8, %v998_v17, %v994_v60  ;;  %1239 = vmatpush.msrb.mxu1 %v1136_v24  ;;  %vm1304_vm8 = vcmask 89088  }
 0x4fc   :  { %v1004_v1 = vsub.f32 1.0, %v999_v9  ;;  %v1006_v61 = vmul.f32 %v999_v9, %v900_v23 }
 0x4fd   :  { %v1002_v43 = vadd.f32 %v1001_v32, %v247_v46  ;;  %v2556_v46 = vld [vmem:[#allocation39_spill] sm:$0xff] }
 0x4fe   :  { %v250_v32 = vadd.f32 %v2556_v46, %v2001_v51  ;;  %v1135_v51 = vld [vmem:[%s2457_s3 + $0x10] sm:$0xff] }
 0x4ff   :  { %1451 = vtanh.f32 %v1002_v43  ;;  %1210 = vmatpush.msrb.mxu0 %v1135_v51  ;;  %1180 = vmatpush.msrb.mxu3 %v1135_v51 }
 0x500   :  { %1240 = vmatpush.msrb.mxu1 %v1135_v51 }
 0x501   :  { %1211 = vmatpush.msrb.mxu0 %v1134_v57  ;;  %1181 = vmatpush.msrb.mxu3 %v1134_v57 }
 0x502   :  { %1241 = vmatpush.msrb.mxu1 %v1134_v57 }
 0x503   :  { %1212 = vmatpush.msrb.mxu0 %v1133_v4  ;;  %1182 = vmatpush.msrb.mxu3 %v1133_v4 }
 0x504   :  { %1242 = vmatpush.msrb.mxu1 %v1133_v4 }
 0x505   :  { %v1452_v36 = vpop.eup %1451 }
 0x506   :  { %v1005_v35 = vmul.f32 %v1452_v36, %v1004_v1 }
 0x508   :  { %v2363_v12 = vadd.f32 %v1006_v61, %v1005_v35 }
 0x50a   :  { %1024 = vmatmul.f32.vlgmr.msra.gmra.mxu3 %v2363_v12  ;;  %1044 = vmatmul.f32.vlgmr.msra.gmra.mxu0 %v2363_v12 }
 0x50b   :  { %1064 = vmatmul.f32.vlgmr.msra.gmra.mxu1 %v2363_v12 }
 0x587   :  { %v1045_v7 = vpop.f32.mrf.mxu0 }
 0x588   :  { %v1046_v16 = vadd.f32 %v1045_v7, %v2539_v21  ;;  %v1065_v52 = vpop.f32.mrf.mxu1 }
 0x589   :  { %v1066_v11 = vadd.f32 %v1065_v52, %v1998_v62 }
 0x58a   :  { %v1088_v20 = vadd.f32 %v1046_v16, %v209_v56 }
 0x58c   :  { %v1366_v23 = vmul.f32 -1.442695, %v1088_v20 }
 0x58d   :  { %v1025_v21 = vpop.f32.mrf.mxu3 }
 0x58e   :  { %1453 = vpow2.f32 %v1366_v23  ;;  %v1026_v28 = vadd.f32 %v1025_v21, %v2538_v19  ;;  %v1118_v19 = vld [vmem:[%s2456_s2 + $0x18] sm:$0xff]  ;;  %v1382_v21 = vld [vmem:[%s2457_s3 + $0x20] ss:$0 sm:$0xff]  ;;  %s1580_s3 = smov 6  }
 0x58f   :  { %1151 = vmatpush.msra.mxu2 %v1118_v19 }
 0x590   :  { %v1068_v33 = vadd.f32 %v1026_v28, %v2555_v31 }
 0x591   :  { %1152 = vmatpush.msra.mxu2 %v1117_v40 }
 0x592   :  { %v1365_v37 = vmul.f32 -1.442695, %v1068_v33 }
 0x593   :  { %1153 = vmatpush.msra.mxu2 %v1116_v13 }
 0x594   :  { %v1454_v59 = vpop.eup %1453  ;;  %1455 = vpow2.f32 %v1365_v37 }
 0x595   :  { %v1092_v26 = vadd.f32 1.0, %v1454_v59  ;;  %1154 = vmatpush.msra.mxu2 %v1115_v18 }
 0x597   :  { %1457 = vrcp.f32 %v1092_v26  ;;  %v1104_v58 = vand.u32 2147483648, %v1092_v26  ;;  %vm1098_vm14 = vweird.f32 %v1092_v26  ;;  %v1102_v43 = vand.u32 2147483647, %v1092_v26 }
 0x599   :  { %v1105_v9 = vor.u32 1.1754944e-38, %v1104_v58  ;;  %vm1103_vm0 = vcmp.eq.f32.partialorder %v1102_v43, 8.507059e+37 }
 0x59a   :  { %v1456_v14 = vpop.eup %1455 }
 0x59b   :  { %v1072_v30 = vadd.f32 1.0, %v1456_v14 }
 0x59d   :  { %1459 = vrcp.f32 %v1072_v30  ;;  %v1458_v27 = vpop.eup %1457  ;;  %v1084_v48 = vand.u32 2147483648, %v1072_v30  ;;  %v1082_v50 = vand.u32 2147483647, %v1072_v30  ;;  %vm1078_vm10 = vweird.f32 %v1072_v30 }
 0x59e   :  { %v1094_v39 = vmul.f32 %v1458_v27, %v1092_v26  ;;  %vm1099_vm13 = vweird.f32 %v1458_v27 }
 0x59f   :  { %v1085_v0 = vor.u32 1.1754944e-38, %v1084_v48  ;;  %vm1083_vm12 = vcmp.eq.f32.partialorder %v1082_v50, 8.507059e+37  ;;  %vm1100_vm15 = vmor %vm1098_vm14, %vm1099_vm13 }
 0x5a0   :  { %v1095_v45 = vsub.f32 1.0, %v1094_v39 }
 0x5a2   :  { %v1096_v53 = vmul.f32 %v1458_v27, %v1095_v45 }
 0x5a3   :  { %v1460_v42 = vpop.eup %1459 }
 0x5a4   :  { %v1074_v44 = vmul.f32 %v1460_v42, %v1072_v30  ;;  %vm1079_vm9 = vweird.f32 %v1460_v42  ;;  %v1097_v8 = vadd.f32 %v1458_v27, %v1096_v53 }
 0x5a5   :  { %vm1080_vm11 = vmor %vm1078_vm10, %vm1079_vm9  ;;  %vm1306_vm9 = vcmask 105472   ;;  %vm1308_vm10 = vcmask 121856  }
 0x5a6   :  { %v1075_v47 = vsub.f32 1.0, %v1074_v44  ;;  %v1101_v17 = vsel %vm1100_vm15, %v1458_v27, %v1097_v8 }
 0x5a7   :  { %v1106_v1 = vsel %vm1103_vm0, %v1105_v9, %v1101_v17 }
 0x5a8   :  { %v1076_v49 = vmul.f32 %v1460_v42, %v1075_v47  ;;  %v1111_v62 = vsub.f32 1.0, %v1106_v1  ;;  %v1113_v61 = vmul.f32 %v1106_v1, %v2363_v12  ;;  %v1131_v12 = vld [vmem:[%s2456_s2 + $0x80] sm:$0x7]  ;;  %s1577_s2 = smov 1  }
 0x5a9   :  { %v1159_v2 = vperm.slane %v1131_v12, 0  ;;  %v1191_v7 = vperm.slane %v1131_v12, 1  ;;  %v1221_v10 = vperm.slane %v1131_v12, 2 }
 0x5aa   :  { %v1077_v54 = vadd.f32 %v1460_v42, %v1076_v49 }
 0x5ac   :  { %v1081_v63 = vsel %vm1080_vm11, %v1460_v42, %v1077_v54 }
 0x5ad   :  { %v1086_v5 = vsel %vm1083_vm12, %v1085_v0, %v1081_v63 }
 0x5ae   :  { %v1108_v41 = vmul.f32 %v1086_v5, %v1066_v11 }
 0x5b0   :  { %v1109_v60 = vadd.f32 %v1108_v41, %v250_v32 }
 0x5b2   :  { %1461 = vtanh.f32 %v1109_v60 }
 0x5b8   :  { %v1462_v36 = vpop.eup %1461 }
 0x5b9   :  { %v1112_v35 = vmul.f32 %v1462_v36, %v1111_v62 }
 0x5bb   :  { %v1114_v3 = vadd.f32 %v1113_v61, %v1112_v35 }
 0x5bd   :  { %1155 = vmatmul.f32.vlgmr.msra.gmra.mxu2 %v1114_v3 }
 0x640   :  { %v1156_v56 = vpop.f32.mrf.mxu2 }
 0x641   :  { %v1157_v16 = vadd.f32 %v1381_v6, %v1156_v56 }
 0x643   :  { %v1160_v38 = vadd.f32 %v1159_v2, %v1157_v16  ;;  %v1192_v20 = vadd.f32 %v1191_v7, %v1157_v16  ;;  %v1222_v22 = vadd.f32 %v1221_v10, %v1157_v16 }
 0x645   :  { %v1161_v23 = vmax.f32 %v1160_v38, 0.0  ;;  %v1193_v25 = vmax.f32 %v1192_v20, 0.0  ;;  %v1223_v15 = vmax.f32 %v1222_v22, 0.0 }
 0x647   :  { %1367 = vmatmul.msk.f32.vlgmr.msrb.gmra.mxu3 %vm1163_vm1, %v1161_v23  ;;  %1368 = vmatmul.msk.f32.vlgmr.msrb.gmra.mxu0 %vm1163_vm1, %v1193_v25 }
 0x648   :  { %1369 = vmatmul.msk.f32.vlgmr.msrb.gmra.mxu1 %vm1163_vm1, %v1223_v15 }
 0x6c4   :  { %v1214_v28 = vpop.f32.mrf.mxu0 }
 0x6c5   :  { %v1215_v29 = vadd.f32 %v1382_v21, %v1214_v28  ;;  %v1244_v31 = vpop.f32.mrf.mxu1 }
 0x6c6   :  { %v1245_v33 = vadd.f32 %v1382_v21, %v1244_v31 }
 0x6c7   :  { %1252 = vrot.lane.b32.xlu0 %v1215_v29, %s1577_s2  ;;  %v1217_v34 = vmul.f32 1.442695, %v1215_v29 }
 0x6c8   :  { %v1247_v59 = vmul.f32 1.442695, %v1245_v33 }
 0x6c9   :  { %1463 = vpow2.f32 %v1217_v34 }
 0x6ca   :  { %v1184_v37 = vpop.f32.mrf.mxu3  ;;  %1465 = vpow2.f32 %v1247_v59 }
 0x6cb   :  { %v1185_v55 = vadd.f32 %v1382_v21, %v1184_v37 }
 0x6cd   :  { %1276 = vrot.lane.b32.xlu2 %v1185_v55, %s1578_s27  ;;  %v1187_v50 = vmul.f32 1.442695, %v1185_v55 }
 0x6cf   :  { %1256 = vrot.lane.b32.xlu0 %v1245_v33, %s1578_s27  ;;  %v1464_v19 = vpop.eup %1463 }
 0x6d0   :  { %v1466_v26 = vpop.eup %1465  ;;  %v1219_v40 = vadd.f32 0.0001, %v1464_v19 }
 0x6d1   :  { %v1249_v13 = vadd.f32 0.0001, %v1466_v26 }
 0x6d2   :  { %v1220_v14 = vmin.f32 %v1219_v40, 1.0 }
 0x6d3   :  { %v1250_v18 = vmin.f32 %v1249_v13, 1.0 }
 0x6d5   :  { %1279 = vrot.lane.b32.xlu2 %v1215_v29, %s1579_s28 }
 0x6d7   :  { %1282 = vrot.lane.b32.xlu0 %v1245_v33, %s1580_s3 }
 0x6dd   :  { %1290 = vrot.lane.b32.xlu2 %v1220_v14, %s1581_s29 }
 0x6df   :  { %1294 = vrot.lane.b32.xlu0 %v1250_v18, %s1582_s30 }
 0x727   :  { %v1277_v11 = vpop.permute.xlu2 %1276 }
 0x72f   :  { %v1280_v8 = vpop.permute.xlu2 %1279 }
 0x737   :  { %v1291_v60 = vpop.permute.xlu2 %1290 }
 0x739   :  { %v1253_v30 = vpop.permute.xlu0 %1252 }
 0x73a   :  { %v1260_v24 = vsel %vm1259_vm2, %v1185_v55, %v1253_v30 }
 0x741   :  { %v1257_v27 = vpop.permute.xlu0 %1256 }
 0x742   :  { %v1262_v39 = vsel %vm1261_vm3, %v1260_v24, %v1257_v27 }
 0x743   :  { %v1264_v42 = vsel %vm1263_vm4, %v1262_v39, -inf }
 0x744   :  { %1265 = vmax.xlane.f32.xlu1 %v1264_v42 }
 0x749   :  { %v1283_v46 = vpop.permute.xlu0 %1282 }
 0x751   :  { %v1295_v9 = vpop.permute.xlu0 %1294 }
 0x7b7   :  { %v1266_v44 = vpop.xlane.xlu1 %1265 }
 0x7b8   :  { %v1267_v45 = vsub.f32 %v1262_v39, %v1266_v44 }
 0x7ba   :  { %v1268_v47 = vmul.f32 1.442695, %v1267_v45 }
 0x7bc   :  { %1467 = vpow2.f32 %v1268_v47 }
 0x7bd   :  { %1469 = vpow2.f32 %v1187_v50 }
 0x7c2   :  { %v1468_v48 = vpop.eup %1467 }
 0x7c3   :  { %v1270_v49 = vsel %vm1263_vm4, %v1468_v48, 0.0  ;;  %v1470_v52 = vpop.eup %1469 }
 0x7c4   :  { %1271 = vadd.xlane.f32.xlu1 %v1270_v49  ;;  %v1189_v53 = vadd.f32 0.0001, %v1470_v52 }
 0x7c6   :  { %v1190_v54 = vmin.f32 %v1189_v53, 1.0 }
 0x7dd   :  { %1286 = vrot.lane.b32.xlu1 %v1190_v54, %s1580_s3 }
 0x837   :  { %v1272_v0 = vpop.xlane.xlu1 %1271 }
 0x838   :  { %1471 = vrcp.f32 %v1272_v0 }
 0x83e   :  { %v1472_v63 = vpop.eup %1471 }
 0x83f   :  { %v1274_v5 = vmul.f32 %v1472_v63, %v1468_v48 }
 0x841   :  { %v1297_v32 = vsel %vm1263_vm4, %v1274_v5, %v1277_v11 }
 0x842   :  { %v1299_v58 = vsel %vm1298_vm5, %v1297_v32, %v1280_v8 }
 0x843   :  { %v1301_v41 = vsel %vm1300_vm6, %v1299_v58, %v1283_v46 }
 0x84f   :  { %v1287_v43 = vpop.permute.xlu1 %1286 }
 0x850   :  { %v1303_v17 = vsel %vm1302_vm7, %v1301_v41, %v1287_v43 }
 0x851   :  { %v1305_v1 = vsel %vm1304_vm8, %v1303_v17, %v1291_v60 }
 0x852   :  { %v1307_v62 = vsel %vm1306_vm9, %v1305_v1, %v1295_v9 }
 0x853   :  { %1309 = vst.msk [vmem:[#allocation5] sm:$0xff] %vm1308_vm10, %v1307_v62 }
 0x854   :  { %1320 = dma.vmem_to_hbm [thread:$0]  %s1316_s6, 128, %s1318_s9, [#allocation4]  }
 0x855   :  { %1571 = dma.done.wait [#allocation4], 128  }
 0x856   :  { %1572 = vsyncadd [#allocation4], 4294967168 }
 0x857   :  { %1325 = vsyncpa [#allocation3], 1 }
 0x858   :  { %1326 = vsyncpa [#allocation4], 1 }

</bundles_post_ra>
